<compile_context>
chip_gen: v7x
topology: tpu7x:2x2x1
jax: 0.10.0
libtpu: 0.0.40
codegen_flags: <defaults>
</compile_context>

<pallas_src>
import functools
import math

import jax
import jax.numpy as jnp
from jax.experimental import pallas as pl
from jax.experimental.pallas import tpu as pltpu


def _has_bf16_eup():
    """bf16 transcendental/elementwise fast path only on v6e / v7x."""
    try:
        kind = jax.devices()[0].device_kind.lower()
    except Exception:
        return False
    return ("v6" in kind) or ("v7" in kind)


# ----------------------------------------------------------------------------
# Pallas kernel: one (batch, head) step of the fused AttentionLayer forward
# ----------------------------------------------------------------------------
def _attention_head_kernel(gamma_ref, xfull_ref, xres_ref, w_ref, b_ref,
                           o_ref, *, dim, bf16_eup):
    """
    gamma_ref: (1,)           SMEM scalar residual gate
    xfull_ref: (C, HW)        full input slab for this batch element (f32)
    xres_ref:  (dim, HW)      this head's channel strip of x (f32, residual)
    w_ref:     (3*dim, C)     this head's stacked [Wq_h; Wk_h; Wv_h] (f32)
    b_ref:     (3*dim, 1)     this head's stacked biases (f32)
    o_ref:     (dim, HW)      output strip = gamma * attn_h + x_h
    """
    # Fused per-head q/k/v 1x1 conv: one bf16 MXU matmul, f32 accumulation.
    x_bf16 = xfull_ref[...].astype(jnp.bfloat16)
    w_bf16 = w_ref[...].astype(jnp.bfloat16)
    qkv = jnp.dot(w_bf16, x_bf16, preferred_element_type=jnp.float32)
    qkv = qkv + b_ref[...]                              # (3*dim, HW) f32

    q = qkv[0:dim].astype(jnp.bfloat16)                 # (dim, HW)
    k = qkv[dim:2 * dim].astype(jnp.bfloat16)
    v = qkv[2 * dim:3 * dim].astype(jnp.bfloat16)

    # scores[p, p'] = sum_d q[d, p] * k[d, p']  — transposed-LHS dot_general
    # (MXU-native), no (HW, dim) transposed intermediate.
    s = jax.lax.dot_general(
        q, k, dimension_numbers=(((0,), (0,)), ((), ())),
        preferred_element_type=jnp.float32)             # (HW, HW) f32

    # Softmax over p' (reference: nn.Softmax(dim=2); no scale in forward).
    s_max = jnp.max(s, axis=-1, keepdims=True)          # f32 row max
    if bf16_eup:
        # v6e / v7x: bf16 exp on the EUP, bf16 normalisation multiply.
        e = jnp.exp((s - s_max).astype(jnp.bfloat16))                # (HW, HW)
        denom = jnp.sum(e, axis=-1, keepdims=True, dtype=jnp.float32)
        inv = pl.reciprocal(denom, approx=True).astype(jnp.bfloat16)
        p = e * inv                                                  # bf16
    else:
        # v5e: no bf16 VPU/EUP — keep elementwise math f32, cast at the MXU.
        e = jnp.exp(s - s_max)
        denom = jnp.sum(e, axis=-1, keepdims=True)
        inv = pl.reciprocal(denom, approx=True)
        p = (e * inv).astype(jnp.bfloat16)

    # out[c, p'] = sum_p v[c, p] * p[p, p']  — bf16 MXU, f32 accumulation.
    oh = jnp.dot(v, p, preferred_element_type=jnp.float32)           # (dim, HW)

    # Residual in f32; lane-dense (dim, HW) store.
    o_ref[...] = gamma_ref[0] * oh + xres_ref[...]


# ----------------------------------------------------------------------------
# Wrapper
# ----------------------------------------------------------------------------
def attention_layer_forward(x_nchw, params, mh):
    B, C, H, W = x_nchw.shape
    assert C % mh == 0, "channels must be divisible by the number of heads"
    dim = C // mh
    HW = H * W

    # Free, contiguous reshape: NCHW -> (B, C, HW); HW stays on the lane axis.
    x3d = x_nchw.reshape(B, C, HW).astype(jnp.float32)

    w_heads = params["w_heads"]        # (mh, 3*dim, C)  f32
    b_heads = params["b_heads"]        # (mh, 3*dim, 1)  f32
    gamma = params["gamma"]            # (1,)            f32

    kernel = functools.partial(_attention_head_kernel, dim=dim,
                               bf16_eup=_has_bf16_eup())

    flops = B * (2 * (3 * C) * C * HW + 4 * C * HW * HW)
    transcendentals = B * mh * HW * HW
    bytes_accessed = 4 * (3 * B * C * HW + 3 * C * C + 3 * C + 1)

    out3d = pl.pallas_call(
        kernel,
        out_shape=jax.ShapeDtypeStruct((B, C, HW), jnp.float32),
        grid=(B, mh),
        in_specs=[
            pl.BlockSpec(memory_space=pltpu.MemorySpace.SMEM),         # gamma
            # full x slab; index_map ignores h -> resident across the head axis
            pl.BlockSpec((None, C, HW), lambda b, h: (b, 0, 0)),
            # per-head x strip for the residual
            pl.BlockSpec((None, dim, HW), lambda b, h: (b, h, 0)),
            # per-head stacked [Wq_h; Wk_h; Wv_h] and biases (exact, no recompute)
            pl.BlockSpec((None, 3 * dim, C), lambda b, h: (h, 0, 0)),
            pl.BlockSpec((None, 3 * dim, 1), lambda b, h: (h, 0, 0)),
        ],
        out_specs=pl.BlockSpec((None, dim, HW), lambda b, h: (b, h, 0)),
        compiler_params=pltpu.CompilerParams(
            dimension_semantics=("parallel", "parallel")),
        cost_estimate=pl.CostEstimate(
            flops=flops, transcendentals=transcendentals,
            bytes_accessed=bytes_accessed),
    )(gamma, x3d, x3d, w_heads, b_heads)

    return out3d.reshape(B, C, H, W)


# ----------------------------------------------------------------------------
# Deterministic parameter construction
# ----------------------------------------------------------------------------
def make_params(key, c, mh):
    dim = c // mh
    ks = jax.random.split(key, 6)
    limit = math.sqrt(6.0 / c)  # kaiming_uniform fan_in for a 1x1 conv

    def w(k):
        return jax.random.uniform(k, (c, c), jnp.float32, -limit, limit)

    wq, wk, wv = w(ks[0]), w(ks[1]), w(ks[2])
    # The PyTorch module zero-inits biases and gamma (output == x); use small
    # non-zero values so the attention path is actually exercised.
    bq = 0.05 * jax.random.normal(ks[3], (c,), jnp.float32)
    bk = 0.05 * jax.random.normal(ks[4], (c,), jnp.float32)
    bv = 0.05 * jax.random.normal(ks[5], (c,), jnp.float32)
    gamma = jnp.array([0.5], jnp.float32)

    # Per-head restack: head h gets rows [h*dim, (h+1)*dim) of Wq, Wk, Wv as a
    # single contiguous (3*dim, C) slab -> exact per-head weight blocks.
    w_heads = jnp.concatenate(
        [wq.reshape(mh, dim, c), wk.reshape(mh, dim, c),
         wv.reshape(mh, dim, c)], axis=1)                     # (mh, 3*dim, C)
    b_heads = jnp.concatenate(
        [bq.reshape(mh, dim), bk.reshape(mh, dim),
         bv.reshape(mh, dim)], axis=1).reshape(mh, 3 * dim, 1)

    return {
        "wq": wq, "wk": wk, "wv": wv,
        "bq": bq, "bk": bk, "bv": bv,
        "w_heads": w_heads, "b_heads": b_heads,
        "gamma": gamma,
    }


# ----------------------------------------------------------------------------
# Pure-JAX reference (mirrors the PyTorch forward's intended semantics, f32)
# ----------------------------------------------------------------------------
def reference_forward(x, p, mh):
    B, C, H, W = x.shape
    HW = H * W
    dim = C // mh
    hp = jax.lax.Precision.HIGHEST
    xf = x.reshape(B, C, HW).astype(jnp.float32)

    def proj(w, b):   # 1x1 conv in (B, C, HW) layout
        return jnp.einsum("oc,bcp->bop", w, xf, precision=hp) + b[None, :, None]

    q = proj(p["wq"], p["bq"])                  # (B, C, HW)
    k = proj(p["wk"], p["bk"])
    v = proj(p["wv"], p["bv"])
    qT = jnp.transpose(q, (0, 2, 1))            # (B, HW, C)

    outs = []
    for i in range(mh):
        lo = i * dim
        q_s = qT[:, :, lo:lo + dim]             # (B, HW, dim)
        k_s = k[:, lo:lo + dim, :]              # (B, dim, HW)
        v_s = v[:, lo:lo + dim, :]              # (B, dim, HW)
        att = jnp.einsum("bpd,bdq->bpq", q_s, k_s, precision=hp)   # (B, HW, HW)
        att = jax.nn.softmax(att, axis=2)
        outs.append(jnp.einsum("bdp,bpq->bdq", v_s, att, precision=hp))
    attn_map = jnp.concatenate(outs, axis=1)    # (B, C, HW)

    out = p["gamma"][0] * attn_map + xf
    return out.reshape(B, C, H, W)


# ----------------------------------------------------------------------------
if __name__ == "__main__":
    key = jax.random.PRNGKey(0)
    k_x, k_p = jax.random.split(key)

    # Smallest realistic configuration implied by the module's docstring
    # (cin == cout, divisible by mh=8): 128 channels, 16x16 spatial, batch 2.
    B, C, H, W = 2, 128, 16, 16
    MH = 8

    x = jax.random.normal(k_x, (B, C, H, W), jnp.float32)   # NCHW like PyTorch
    params = make_params(k_p, C, MH)

    fwd = jax.jit(functools.partial(attention_layer_forward, mh=MH))
    out = jax.block_until_ready(fwd(x, params))

    ref = reference_forward(x, params, MH)
    assert out.shape == (B, C, H, W)

    diff = jnp.abs(out - ref)
    max_diff = float(jnp.max(diff))
    mean_diff = float(jnp.mean(diff))
    # Kernel feeds the MXU bf16 (with f32 accumulation) and uses bf16/approx
    # softmax pieces; the reference is all-f32 HIGHEST precision and this
    # module's unscaled softmax is very peaked, so near-tie rows can amplify
    # bf16 score rounding.  Check a tight mean error and a bf16-level max.
    assert mean_diff < 2e-2, f"mean abs diff {mean_diff}"
    assert jnp.allclose(out, ref, atol=1e-1, rtol=5e-2), (
        f"max abs diff {max_diff}")

    print("KERNEL_OK")
</pallas_src>

<mosaic_0001>
module attributes {stable_mosaic.version = 11 : i64} {
  func.func @_attention_head_kernel(%arg0: i32, %arg1: i32, %arg2: memref<1xf32, #tpu.memory_space<smem>>, %arg3: memref<1x128x256xf32, #tpu.memory_space<vmem>>, %arg4: memref<1x16x256xf32, #tpu.memory_space<vmem>>, %arg5: memref<1x48x128xf32, #tpu.memory_space<vmem>>, %arg6: memref<1x48x1xf32, #tpu.memory_space<vmem>>, %arg7: memref<1x16x256xf32, #tpu.memory_space<vmem>>) attributes {dimension_semantics = [#tpu.dimension_semantics<parallel>, #tpu.dimension_semantics<parallel>], iteration_bounds = array<i64: 2, 8>, scalar_prefetch = 0 : i64, scratch_operands = 0 : i64, tpu.core_type = #tpu.core_type<tc>, window_params = [{transform_indices = @transform_0, window_bounds = array<i64: 1>}, {transform_indices = @transform_1, window_bounds = array<i64: 1, 128, 256>}, {transform_indices = @transform_2, window_bounds = array<i64: 1, 16, 256>}, {transform_indices = @transform_3, window_bounds = array<i64: 1, 48, 128>}, {transform_indices = @transform_4, window_bounds = array<i64: 1, 48, 1>}, {transform_indices = @transform_5, window_bounds = array<i64: 1, 16, 256>}]} {
    %c0 = arith.constant 0 : index
    %c0_0 = arith.constant 0 : index
    %c0_1 = arith.constant 0 : index
    %0 = vector.load %arg3[%c0, %c0_0, %c0_1] : memref<1x128x256xf32, #tpu.memory_space<vmem>>, vector<1x128x256xf32>
    %1 = vector.shape_cast %0 : vector<1x128x256xf32> to vector<128x256xf32>
    %2 = arith.truncf %1 : vector<128x256xf32> to vector<128x256xbf16>
    %c0_2 = arith.constant 0 : index
    %c0_3 = arith.constant 0 : index
    %c0_4 = arith.constant 0 : index
    %3 = vector.load %arg5[%c0_2, %c0_3, %c0_4] : memref<1x48x128xf32, #tpu.memory_space<vmem>>, vector<1x48x128xf32>
    %4 = vector.shape_cast %3 : vector<1x48x128xf32> to vector<48x128xf32>
    %5 = arith.truncf %4 : vector<48x128xf32> to vector<48x128xbf16>
    %cst = arith.constant dense<0.000000e+00> : vector<48x256xf32>
    %6 = tpu.matmul %5, %2, %cst {dimension_numbers = #tpu.dot_dimension_numbers<[1], [0], [0], [1], [0, 0, 1, 1], [], []>} : vector<48x128xbf16>, vector<128x256xbf16>, vector<48x256xf32> -> vector<48x256xf32>
    %c0_5 = arith.constant 0 : index
    %c0_6 = arith.constant 0 : index
    %c0_7 = arith.constant 0 : index
    %7 = vector.load %arg6[%c0_5, %c0_6, %c0_7] : memref<1x48x1xf32, #tpu.memory_space<vmem>>, vector<1x48x1xf32>
    %8 = vector.shape_cast %7 : vector<1x48x1xf32> to vector<48x1xf32>
    %9 = vector.broadcast %8 : vector<48x1xf32> to vector<48x256xf32>
    %10 = arith.addf %6, %9 : vector<48x256xf32>
    %11 = vector.extract_strided_slice %10 {offsets = [0, 0], sizes = [16, 256], strides = [1, 1]} : vector<48x256xf32> to vector<16x256xf32>
    %12 = arith.truncf %11 : vector<16x256xf32> to vector<16x256xbf16>
    %13 = vector.extract_strided_slice %10 {offsets = [16, 0], sizes = [16, 256], strides = [1, 1]} : vector<48x256xf32> to vector<16x256xf32>
    %14 = arith.truncf %13 : vector<16x256xf32> to vector<16x256xbf16>
    %15 = vector.extract_strided_slice %10 {offsets = [32, 0], sizes = [16, 256], strides = [1, 1]} : vector<48x256xf32> to vector<16x256xf32>
    %16 = arith.truncf %15 : vector<16x256xf32> to vector<16x256xbf16>
    %cst_8 = arith.constant dense<0.000000e+00> : vector<256x256xf32>
    %17 = tpu.matmul %12, %14, %cst_8 {dimension_numbers = #tpu.dot_dimension_numbers<[0], [0], [1], [1], [0, 1, 1, 1], [], []>} : vector<16x256xbf16>, vector<16x256xbf16>, vector<256x256xf32> -> vector<256x256xf32>
    %cst_9 = arith.constant dense<0xFF800000> : vector<256xf32>
    %18 = vector.multi_reduction <maximumf>, %17, %cst_9 [1] : vector<256x256xf32> to vector<256xf32>
    %19 = vector.shape_cast %18 : vector<256xf32> to vector<256x1xf32>
    %20 = vector.broadcast %19 : vector<256x1xf32> to vector<256x256xf32>
    %21 = arith.subf %17, %20 : vector<256x256xf32>
    %22 = math.exp %21 : vector<256x256xf32>
    %cst_10 = arith.constant dense<0.000000e+00> : vector<256xf32>
    %23 = vector.multi_reduction <add>, %22, %cst_10 [1] : vector<256x256xf32> to vector<256xf32>
    %24 = vector.shape_cast %23 : vector<256xf32> to vector<256x1xf32>
    %25 = tpu.reciprocal %24 {approx = true} : vector<256x1xf32> -> vector<256x1xf32>
    %26 = vector.broadcast %25 : vector<256x1xf32> to vector<256x256xf32>
    %27 = arith.mulf %22, %26 : vector<256x256xf32>
    %28 = arith.truncf %27 : vector<256x256xf32> to vector<256x256xbf16>
    %cst_11 = arith.constant dense<0.000000e+00> : vector<16x256xf32>
    %29 = tpu.matmul %16, %28, %cst_11 {dimension_numbers = #tpu.dot_dimension_numbers<[1], [0], [0], [1], [0, 0, 1, 1], [], []>} : vector<16x256xbf16>, vector<256x256xbf16>, vector<16x256xf32> -> vector<16x256xf32>
    %c0_12 = arith.constant 0 : index
    %30 = memref.load %arg2[%c0_12] : memref<1xf32, #tpu.memory_space<smem>>
    %31 = vector.broadcast %30 : f32 to vector<16x256xf32>
    %32 = arith.mulf %31, %29 : vector<16x256xf32>
    %c0_13 = arith.constant 0 : index
    %c0_14 = arith.constant 0 : index
    %c0_15 = arith.constant 0 : index
    %33 = vector.load %arg4[%c0_13, %c0_14, %c0_15] : memref<1x16x256xf32, #tpu.memory_space<vmem>>, vector<1x16x256xf32>
    %34 = vector.shape_cast %33 : vector<1x16x256xf32> to vector<16x256xf32>
    %35 = arith.addf %32, %34 : vector<16x256xf32>
    %c0_16 = arith.constant 0 : index
    %c0_17 = arith.constant 0 : index
    %c0_18 = arith.constant 0 : index
    %36 = vector.load %arg7[%c0_16, %c0_17, %c0_18] : memref<1x16x256xf32, #tpu.memory_space<vmem>>, vector<1x16x256xf32>
    %37 = vector.shape_cast %36 : vector<1x16x256xf32> to vector<16x256xf32>
    %38 = vector.shape_cast %35 : vector<16x256xf32> to vector<1x16x256xf32>
    tpu.vector_store %arg7[%c0_16, %c0_17, %c0_18], %38 {strides = array<i32>} : memref<1x16x256xf32, #tpu.memory_space<vmem>>, vector<1x16x256xf32>,
    return
  }
  func.func @transform_0(%arg0: i32, %arg1: i32) -> i32 {
    %c0_i32 = arith.constant 0 : i32
    %c0_i32_0 = arith.constant 0 : i32
    return %c0_i32 : i32
  }
  func.func @transform_1(%arg0: i32, %arg1: i32) -> (i32, i32, i32) {
    %c0_i32 = arith.constant 0 : i32
    %c0_i32_0 = arith.constant 0 : i32
    %c0_i32_1 = arith.constant 0 : i32
    return %arg0, %c0_i32, %c0_i32_0 : i32, i32, i32
  }
  func.func @transform_2(%arg0: i32, %arg1: i32) -> (i32, i32, i32) {
    %c0_i32 = arith.constant 0 : i32
    %c0_i32_0 = arith.constant 0 : i32
    return %arg0, %arg1, %c0_i32 : i32, i32, i32
  }
  func.func @transform_3(%arg0: i32, %arg1: i32) -> (i32, i32, i32) {
    %c0_i32 = arith.constant 0 : i32
    %c0_i32_0 = arith.constant 0 : i32
    %c0_i32_1 = arith.constant 0 : i32
    return %arg1, %c0_i32, %c0_i32_0 : i32, i32, i32
  }
  func.func @transform_4(%arg0: i32, %arg1: i32) -> (i32, i32, i32) {
    %c0_i32 = arith.constant 0 : i32
    %c0_i32_0 = arith.constant 0 : i32
    %c0_i32_1 = arith.constant 0 : i32
    return %arg1, %c0_i32, %c0_i32_0 : i32, i32, i32
  }
  func.func @transform_5(%arg0: i32, %arg1: i32) -> (i32, i32, i32) {
    %c0_i32 = arith.constant 0 : i32
    %c0_i32_0 = arith.constant 0 : i32
    return %arg0, %arg1, %c0_i32 : i32, i32, i32
  }
}

</mosaic_0001>

<bundles_post_ra>
// kernel: attention_layer_forward.1
= control target key start
LH: loop header
LB: loop body
LE: loop exit
PB: predicated region body
PF: predicated region fallthrough
CT: control target
= control target key end

     0   :  { %s1821_s20 = smov 0   ;;  %s1823_s21 = smov 0   ;;  %s2510_s0 = inlined_call_operand.<no memory space> [shape: f32[1], index: 0, kind: input, shape index: {}]   ;;  %s2511_s1 = inlined_call_operand.vmem [shape: f32[2,128,256], index: 1, kind: input, shape index: {}, may-alias: {1,2}]   ;;  %s2512_s2 = inlined_call_operand.vmem [shape: f32[2,128,256], index: 2, kind: input, shape index: {}, may-alias: {1,2}]   ;;  %s2513_s3 = inlined_call_operand.vmem [shape: f32[8,48,128], index: 3, kind: input, shape index: {}]   ;;  %s2514_s4 = inlined_call_operand.vmem [shape: f32[8,48,1], index: 4, kind: input, shape index: {}]   ;;  %s2515_s5 = inlined_call_operand.vmem [shape: f32[2,128,256], index: 5, kind: output, shape index: {}]  }
   0x1   :  { %10 = sst [smem:[#allocation2]] %s2510_s0  ;;  %s1825_s22 = smov 0  }
   0x2   :  { %s1827_s23 = smov 0   ;;  %s1829_s24 = smov 0  }
   0x3 LB: > { %s25_s0 = sadd.s32 1, %s1777_s22  ;;  %s28_s25 = sadd.s32 1, %s1781_s23  ;;  %s1785_s24 = sphi %s1829_s24, %s16_s24   ;;  %s1781_s23 = sphi %s1827_s23, %s2608_s23   ;;  %s1777_s22 = sphi %s1825_s22, %s2607_s22   ;;  %s1773_s21 = sphi %s1823_s21, %s2606_s21   ;;  %s1769_s20 = sphi %s1821_s20, %s2605_s20  }
   0x4   : > { %p26_p0 = scmp.ge.s32.totalorder %s25_s0, 8  ;;  %p1479_p1 = scmp.ge.s32.totalorder %s1785_s24, 1 }
   0x5   : > { %p240_p2 = scmp.lt.s32.totalorder %s1785_s24, 17 }
   0x6   : > { %s2610_s0 = smov (%p26_p0, %s25_s0), 0  ;;  %s2612_s25 = smov (!%p26_p0, %s28_s25), %s1781_s23 }
   0x7   : > { %p241_p3 = pnand %p1479_p1, %p240_p2  ;;  %p30_p4 = scmp.ge.s32.totalorder %s2612_s25, 2 }
   0x9   : > { %s2614_s25 = smov (%p30_p4, %s2612_s25), 0  ;;  %244 = sbr.rel (%p241_p3) target bundleno = 1255 (0x4e7), region = 40 }
  0x10   : > { %p293_p5 = scmp.lt.s32.totalorder %s1773_s21, 1  ;;  %v1787_v0 = vmov 0   ;;  %p309_p6 = scmp.lt.s32.totalorder %s1769_s20, 7  ;;  %vm525_vm0 = vcmask 130048  }
  0x11   : > { %456 = vmatprep.mubr.bf16.mxu0 %v1787_v0  ;;  %1553 = vset.pattern.permute.xlu0 %v1787_v0  ;;  %s1482_s13 = sshll.u32 %s1769_s20, 1  ;;  %s1322_s16 = sld [smem:[#allocation2]] }
  0x12   : > { %s2616_s21 = smov (!%p293_p5, %s1773_s21), 1  ;;  %1554 = vset.pattern.permute.xlu1 %v1787_v0  ;;  %606 = vmatprep.mubr.bf16.mxu1 %v1787_v0  ;;  %p301_p7 = scmp.lt.s32.totalorder %s1482_s13, 15 }
  0x13   : > { %s1510_s26 = sshll.u32 %s2616_s21, 8  ;;  %s1484_s15 = sshll.u32 %s2616_s21, 5 }
  0x14   : > { %s1864_s29 = scalar_lea.vmem %s2511_s1, %s1510_s26  ;;  %s2618_s13 = smov (!%p301_p7, %s1482_s13), 15 }
  0x15   : > { %v332_v1 = vld [vmem:[%s1864_s29 + $0x8] sm:$0xff]  ;;  %v334_v2 = vld [vmem:[%s1864_s29 + $0x18] sm:$0xff]  ;;  %v331_v3 = vld [vmem:[%s1864_s29] sm:$0xff]  ;;  %s1878_s30 = scalar_select %p309_p6, %s1769_s20, 7 }
  0x16   : > { %v364_v4 = vpack.c.bf16 %v334_v2, %v332_v1  ;;  %v333_v5 = vld [vmem:[%s1864_s29 + $0x10] sm:$0xff]  ;;  %v336_v6 = vld [vmem:[%s1864_s29 + $0x28] sm:$0xff]  ;;  %v338_v7 = vld [vmem:[%s1864_s29 + $0x38] sm:$0xff]  ;;  %s1483_s14 = sshll.u32 %s2618_s13, 1 }
  0x17   : > { %v363_v8 = vpack.c.bf16 %v333_v5, %v331_v3  ;;  %v366_v9 = vpack.c.bf16 %v338_v7, %v336_v6  ;;  %v335_v10 = vld [vmem:[%s1864_s29 + $0x20] sm:$0xff]  ;;  %v337_v11 = vld [vmem:[%s1864_s29 + $0x30] sm:$0xff]  ;;  %v340_v12 = vld [vmem:[%s1864_s29 + $0x48] sm:$0xff]  ;;  %s1511_s6 = smul.u32 48, %s1878_s30  ;;  %s305_s17 = sadd.s32 %s1484_s15, %s1483_s14 }
  0x18   : > { %424 = vmatprep.subr.bf16.mxu0 %v364_v4  ;;  %v342_v13 = vld [vmem:[%s1864_s29 + $0x58] sm:$0xff]  ;;  %v365_v14 = vpack.c.bf16 %v337_v11, %v335_v10  ;;  %v339_v16 = vld [vmem:[%s1864_s29 + $0x40] sm:$0xff]  ;;  %v341_v17 = vld [vmem:[%s1864_s29 + $0x50] sm:$0xff]  ;;  %s1485_s18 = sshll.u32 %s305_s17, 3 }
  0x19   : > { %425 = vmatpush1.bf16.msra.mxu0 %v363_v8  ;;  %v368_v15 = vpack.c.bf16 %v342_v13, %v340_v12  ;;  %v344_v18 = vld [vmem:[%s1864_s29 + $0x68] sm:$0xff]  ;;  %v346_v19 = vld [vmem:[%s1864_s29 + $0x78] sm:$0xff]  ;;  %v367_v20 = vpack.c.bf16 %v341_v17, %v339_v16  ;;  %s1891_s9 = scalar_lea.vmem %s2514_s4, %s1511_s6  ;;  %v343_v22 = vld [vmem:[%s1864_s29 + $0x60] sm:$0xff]  ;;  %s1920_s12 = scalar_lea.vmem %s2513_s3, %s1511_s6 }
  0x1a   : > { %426 = vmatprep.subr.bf16.mxu0 %v366_v9  ;;  %v370_v21 = vpack.c.bf16 %v346_v19, %v344_v18  ;;  %v345_v23 = vld [vmem:[%s1864_s29 + $0x70] sm:$0xff]  ;;  %v348_v24 = vld [vmem:[%s1864_s29 + $0x88] sm:$0xff]  ;;  %v350_v25 = vld [vmem:[%s1864_s29 + $0x98] sm:$0xff]  ;;  %s307_s27 = scalar_lea.vmem %s2512_s2, %s1485_s18  ;;  %s328_s20 = scalar_lea.vmem %s2515_s5, %s1485_s18 }
  0x1b   : > { %v388_v26 = vld [vmem:[%s1891_s9] sm:$0xff]  ;;  %v369_v27 = vpack.c.bf16 %v345_v23, %v343_v22  ;;  %v390_v28 = vld [vmem:[%s1891_s9 + $0x10] sm:$0xff]  ;;  %v372_v29 = vpack.c.bf16 %v350_v25, %v348_v24  ;;  %v389_v32 = vld [vmem:[%s1891_s9 + $0x8] sm:$0xff] }
  0x1c   : > { %396 = vperm.xlu0 %1553, %v388_v26   ;;  %v347_v30 = vld [vmem:[%s1864_s29 + $0x80] sm:$0xff]  ;;  %v349_v31 = vld [vmem:[%s1864_s29 + $0x90] sm:$0xff]  ;;  %406 = vperm.xlu1 %1554, %v390_v28   ;;  %v352_v33 = vld [vmem:[%s1864_s29 + $0xa8] sm:$0xff] }
  0x1d   : > { %427 = vmatpush1.bf16.msra.mxu0 %v365_v14  ;;  %v354_v34 = vld [vmem:[%s1864_s29 + $0xb8] sm:$0xff]  ;;  %v371_v36 = vpack.c.bf16 %v349_v31, %v347_v30  ;;  %v351_v38 = vld [vmem:[%s1864_s29 + $0xa0] sm:$0xff]  ;;  %v353_v39 = vld [vmem:[%s1864_s29 + $0xb0] sm:$0xff] }
  0x1e   : > { %428 = vmatprep.subr.bf16.mxu0 %v368_v15  ;;  %v391_v35 = vld [vmem:[%s1891_s9 + $0x18] sm:$0xff]  ;;  %v374_v37 = vpack.c.bf16 %v354_v34, %v352_v33  ;;  %v356_v40 = vld [vmem:[%s1864_s29 + $0xc8] sm:$0xff]  ;;  %v373_v42 = vpack.c.bf16 %v353_v39, %v351_v38  ;;  %v355_v44 = vld [vmem:[%s1864_s29 + $0xc0] sm:$0xff] }
  0x1f   : > { %v358_v41 = vld [vmem:[%s1864_s29 + $0xd8] sm:$0xff]  ;;  %v357_v45 = vld [vmem:[%s1864_s29 + $0xd0] sm:$0xff]  ;;  %v360_v46 = vld [vmem:[%s1864_s29 + $0xe8] sm:$0xff] }
  0x20   : > { %401 = vperm.xlu0 %1553, %v389_v32   ;;  %411 = vperm.xlu1 %1554, %v391_v35   ;;  %v376_v43 = vpack.c.bf16 %v358_v41, %v356_v40  ;;  %v362_v47 = vld [vmem:[%s1864_s29 + $0xf8] sm:$0xff]  ;;  %v375_v48 = vpack.c.bf16 %v357_v45, %v355_v44  ;;  %v359_v50 = vld [vmem:[%s1864_s29 + $0xe0] sm:$0xff]  ;;  %v361_v51 = vld [vmem:[%s1864_s29 + $0xf0] sm:$0xff] }
  0x21   : > { %429 = vmatpush1.bf16.msra.mxu0 %v367_v20  ;;  %v378_v49 = vpack.c.bf16 %v362_v47, %v360_v46  ;;  %v377_v52 = vpack.c.bf16 %v361_v51, %v359_v50  ;;  %v379_v53 = vld [vmem:[%s1920_s12] sm:$0xff]  ;;  %v380_v54 = vld [vmem:[%s1920_s12 + $0x8] sm:$0xff]  ;;  %v381_v56 = vld [vmem:[%s1920_s12 + $0x10] sm:$0xff] }
  0x22   : > { %430 = vmatprep.subr.bf16.mxu0 %v370_v21  ;;  %v385_v55 = vpack.c.bf16 %v380_v54, %v379_v53  ;;  %v382_v57 = vld [vmem:[%s1920_s12 + $0x18] sm:$0xff] }
  0x23   : > { %v386_v58 = vpack.c.bf16 %v382_v57, %v381_v56 }
  0x25   : > { %431 = vmatpush1.bf16.msra.mxu0 %v369_v27 }
  0x26   : > { %432 = vmatprep.subr.bf16.mxu0 %v372_v29 }
  0x29   : > { %433 = vmatpush1.bf16.msra.mxu0 %v371_v36 }
  0x2a   : > { %434 = vmatprep.subr.bf16.mxu0 %v374_v37 }
  0x2d   : > { %435 = vmatpush1.bf16.msra.mxu0 %v373_v42 }
  0x2e   : > { %436 = vmatprep.subr.bf16.mxu0 %v376_v43 }
  0x31   : > { %437 = vmatpush1.bf16.msra.mxu0 %v375_v48 }
  0x32   : > { %438 = vmatprep.subr.bf16.mxu0 %v378_v49 }
  0x35   : > { %439 = vmatpush1.bf16.msra.mxu0 %v377_v52 }
  0x38   : > { %457 = vmatmul.mubr.bf16.vlgmr.msra.gmra.mrb[0].mxu0 %v385_v55 }
  0x39   : > { %466 = vmatprep.mubr.bf16.mxu0 %v1787_v0 }
  0x40   : > { %467 = vmatmul.mubr.bf16.gmra.mrb[4].mxu0 %v386_v58 }
  0x41   : > { %476 = vmatprep.mubr.bf16.mxu0 %v1787_v0 }
  0x9b   : > { %v397_v59 = vpop.permute.xlu0 %396  ;;  %v407_v62 = vpop.permute.xlu1 %406 }
  0x9f   : > { %v402_v63 = vpop.permute.xlu0 %401  ;;  %v412_v10 = vpop.permute.xlu1 %411 }
 0x10b   : > { %v458_v60 = vpop.f32.mrb[0].mxu0 }
 0x10c   : > { %v460_v61 = vpop.f32.mrb[1].mxu0  ;;  %v459_v2 = vadd.f32 %v458_v60, %v397_v59 }
 0x10d   : > { %v462_v1 = vpop.f32.mrb[2].mxu0  ;;  %v461_v5 = vadd.f32 %v460_v61, %v397_v59 }
 0x10e   : > { %v463_v3 = vadd.f32 %v462_v1, %v402_v63  ;;  %v464_v4 = vpop.f32.mrb[3].mxu0 }
 0x10f   : > { %v465_v6 = vadd.f32 %v464_v4, %v402_v63 }
 0x110   : > { %v487_v7 = vpack.c.bf16 %v463_v3, %v459_v2 }
 0x111   : > { %v488_v8 = vpack.c.bf16 %v465_v6, %v461_v5 }
 0x112   : > { %493 = vxpose.xlu0.c.b16.start.end [1/1] (short) %v487_v7, 128 }
 0x113   : > { %509 = vxpose.xlu1.c.b16.start.end [1/1] (short) %v488_v8, 128  ;;  %v468_v9 = vpop.f32.mrb[4].mxu0 }
 0x114   : > { %v469_v11 = vadd.f32 %v468_v9, %v407_v62  ;;  %v470_v12 = vpop.f32.mrb[5].mxu0 }
 0x115   : > { %v471_v13 = vadd.f32 %v470_v12, %v407_v62  ;;  %v472_v14 = vpop.f32.mrb[6].mxu0 }
 0x116   : > { %v473_v15 = vadd.f32 %v472_v14, %v412_v10  ;;  %v474_v16 = vpop.f32.mrb[7].mxu0 }
 0x117   : > { %v475_v17 = vadd.f32 %v474_v16, %v412_v10 }
 0x118   : > { %v489_v18 = vpack.c.bf16 %v473_v15, %v469_v11 }
 0x119   : > { %v490_v19 = vpack.c.bf16 %v475_v17, %v471_v13 }
 0x11b   : > { %574 = vmatprep.subr.bf16.mxu1 %v490_v19 }
 0x11c   : > { %575 = vmatpush1.bf16.msra.mxu1 %v489_v18 }
 0x178   : > { %v501_v20 = vpop.trf.xlu0 }
 0x179   : > { %1492 = vmatmul.mubr.msk.bf16.vlgmr.msra.gmra.mrb[0].mxu1 %vm525_vm0, %v501_v20  ;;  %v517_v28 = vpop.trf.xlu1 }
 0x17a   : > { %616 = vmatprep.mubr.bf16.mxu1 %v1787_v0 }
 0x17c   : > { %v502_v21 = vpop.trf.xlu0 }
 0x17d   : > { %v518_v29 = vpop.trf.xlu1 }
 0x180   : > { %v503_v22 = vpop.trf.xlu0 }
 0x181   : > { %1493 = vmatmul.mubr.msk.bf16.gmra.mrb[4].mxu1 %vm525_vm0, %v502_v21  ;;  %v519_v30 = vpop.trf.xlu1 }
 0x182   : > { %626 = vmatprep.mubr.bf16.mxu1 %v1787_v0 }
 0x184   : > { %v504_v23 = vpop.trf.xlu0 }
 0x185   : > { %v520_v31 = vpop.trf.xlu1 }
 0x188   : > { %v505_v24 = vpop.trf.xlu0 }
 0x189   : > { %1494 = vmatmul.mubr.msk.bf16.gmra.mrb[8].mxu1 %vm525_vm0, %v503_v22  ;;  %v521_v32 = vpop.trf.xlu1 }
 0x18a   : > { %636 = vmatprep.mubr.bf16.mxu1 %v1787_v0 }
 0x18c   : > { %v506_v25 = vpop.trf.xlu0 }
 0x18d   : > { %v522_v33 = vpop.trf.xlu1 }
 0x190   : > { %v507_v26 = vpop.trf.xlu0 }
 0x191   : > { %1495 = vmatmul.mubr.msk.bf16.gmra.mrb[12].mxu1 %vm525_vm0, %v504_v23  ;;  %v523_v34 = vpop.trf.xlu1 }
 0x192   : > { %646 = vmatprep.mubr.bf16.mxu1 %v1787_v0 }
 0x194   : > { %v508_v27 = vpop.trf.xlu0 }
 0x195   : > { %v524_v35 = vpop.trf.xlu1 }
 0x199   : > { %1496 = vmatmul.mubr.msk.bf16.gmra.mrb[16].mxu1 %vm525_vm0, %v505_v24 }
 0x19a   : > { %656 = vmatprep.mubr.bf16.mxu1 %v1787_v0 }
 0x1a1   : > { %1497 = vmatmul.mubr.msk.bf16.gmra.mrb[20].mxu1 %vm525_vm0, %v506_v25 }
 0x1a2   : > { %666 = vmatprep.mubr.bf16.mxu1 %v1787_v0 }
 0x1a9   : > { %1498 = vmatmul.mubr.msk.bf16.gmra.mrb[24].mxu1 %vm525_vm0, %v507_v26 }
 0x1aa   : > { %676 = vmatprep.mubr.bf16.mxu1 %v1787_v0 }
 0x1b1   : > { %1499 = vmatmul.mubr.msk.bf16.gmra.mrb[28].mxu1 %vm525_vm0, %v508_v27 }
 0x1b2   : > { %686 = vmatprep.mubr.bf16.mxu1 %v1787_v0 }
 0x1b9   : > { %1500 = vmatmul.mubr.msk.bf16.gmra.mrb[32].mxu1 %vm525_vm0, %v517_v28 }
 0x1ba   : > { %696 = vmatprep.mubr.bf16.mxu1 %v1787_v0 }
 0x1c1   : > { %1501 = vmatmul.mubr.msk.bf16.gmra.mrb[36].mxu1 %vm525_vm0, %v518_v29 }
 0x1c2   : > { %706 = vmatprep.mubr.bf16.mxu1 %v1787_v0 }
 0x1c9   : > { %1502 = vmatmul.mubr.msk.bf16.gmra.mrb[40].mxu1 %vm525_vm0, %v519_v30 }
 0x1ca   : > { %716 = vmatprep.mubr.bf16.mxu1 %v1787_v0 }
 0x1d1   : > { %1503 = vmatmul.mubr.msk.bf16.gmra.mrb[44].mxu1 %vm525_vm0, %v520_v31 }
 0x1d2   : > { %726 = vmatprep.mubr.bf16.mxu1 %v1787_v0 }
 0x1d9   : > { %1504 = vmatmul.mubr.msk.bf16.gmra.mrb[48].mxu1 %vm525_vm0, %v521_v32 }
 0x1da   : > { %736 = vmatprep.mubr.bf16.mxu1 %v1787_v0 }
 0x1e1   : > { %1505 = vmatmul.mubr.msk.bf16.gmra.mrb[52].mxu1 %vm525_vm0, %v522_v33 }
 0x1e2   : > { %746 = vmatprep.mubr.bf16.mxu1 %v1787_v0 }
 0x1e9   : > { %1506 = vmatmul.mubr.msk.bf16.gmra.mrb[56].mxu1 %vm525_vm0, %v523_v34 }
 0x1ea   : > { %756 = vmatprep.mubr.bf16.mxu1 %v1787_v0 }
 0x1f1   : > { %1507 = vmatmul.mubr.msk.bf16.gmra.mrb[60].mxu1 %vm525_vm0, %v524_v35 }
 0x24c   : > { %v1959_v36 = vpop.f32.mrb[0].mxu1 }
 0x24d   : > { %v1961_v37 = vpop.f32.mrb[1].mxu1 }
 0x24e   : > { %v1963_v38 = vpop.f32.mrb[2].mxu1  ;;  %v767_v39 = vmax.f32 %v1959_v36, %v1961_v37 }
 0x24f   : > { %v1967_v40 = vpop.f32.mrb[3].mxu1 }
 0x250   : > { %768 = vmax.xlane.f32.xlu0 %v767_v39  ;;  %v770_v41 = vmax.f32 %v1963_v38, %v1967_v40 }
 0x252   : > { %771 = vmax.xlane.f32.xlu1 %v770_v41 }
 0x254   : > { %v1971_v0 = vpop.f32.mrb[4].mxu1 }
 0x255   : > { %v1973_v42 = vpop.f32.mrb[5].mxu1 }
 0x256   : > { %v1975_v43 = vpop.f32.mrb[6].mxu1  ;;  %v773_v44 = vmax.f32 %v1971_v0, %v1973_v42 }
 0x257   : > { %v1979_v45 = vpop.f32.mrb[7].mxu1 }
 0x258   : > { %774 = vmax.xlane.f32.xlu0 %v773_v44  ;;  %v776_v46 = vmax.f32 %v1975_v43, %v1979_v45  ;;  %v383_v44 = vld [vmem:[%s1920_s12 + $0x20] sm:$0xff] }
 0x25c   : > { %777 = vmax.xlane.f32.xlu0 %v776_v46  ;;  %v1983_v47 = vpop.f32.mrb[8].mxu1  ;;  %v384_v46 = vld [vmem:[%s1920_s12 + $0x28] sm:$0xff] }
 0x25d   : > { %v1985_v48 = vpop.f32.mrb[9].mxu1 }
 0x25e   : > { %v1987_v49 = vpop.f32.mrb[10].mxu1  ;;  %v779_v50 = vmax.f32 %v1983_v47, %v1985_v48 }
 0x25f   : > { %v1991_v51 = vpop.f32.mrb[11].mxu1 }
 0x260   : > { %780 = vmax.xlane.f32.xlu1 %v779_v50  ;;  %v782_v52 = vmax.f32 %v1987_v49, %v1991_v51 }
 0x262   : > { %783 = vmax.xlane.f32.xlu0 %v782_v52  ;;  %v387_v52 = vpack.c.bf16 %v384_v46, %v383_v44 }
 0x264   : > { %v1995_v53 = vpop.f32.mrb[12].mxu1  ;;  %477 = vmatmul.mubr.bf16.gmra.mrb[8].mxu0 %v387_v52 }
 0x265   : > { %v1997_v54 = vpop.f32.mrb[13].mxu1 }
 0x266   : > { %v1999_v55 = vpop.f32.mrb[14].mxu1  ;;  %v785_v56 = vmax.f32 %v1995_v53, %v1997_v54 }
 0x267   : > { %v2003_v57 = vpop.f32.mrb[15].mxu1 }
 0x268   : > { %786 = vmax.xlane.f32.xlu1 %v785_v56  ;;  %v788_v58 = vmax.f32 %v1999_v55, %v2003_v57 }
 0x26a   : > { %789 = vmax.xlane.f32.xlu0 %v788_v58 }
 0x26c   : > { %v2007_v59 = vpop.f32.mrb[16].mxu1 }
 0x26d   : > { %v2009_v60 = vpop.f32.mrb[17].mxu1 }
 0x26e   : > { %v2011_v61 = vpop.f32.mrb[18].mxu1  ;;  %v791_v62 = vmax.f32 %v2007_v59, %v2009_v60 }
 0x26f   : > { %v2015_v63 = vpop.f32.mrb[19].mxu1 }
 0x270   : > { %792 = vmax.xlane.f32.xlu1 %v791_v62  ;;  %v794_v1 = vmax.f32 %v2011_v61, %v2015_v63 }
 0x272   : > { %795 = vmax.xlane.f32.xlu0 %v794_v1 }
 0x274   : > { %v2019_v2 = vpop.f32.mrb[20].mxu1 }
 0x275   : > { %v2021_v3 = vpop.f32.mrb[21].mxu1 }
 0x276   : > { %v2023_v4 = vpop.f32.mrb[22].mxu1  ;;  %v797_v5 = vmax.f32 %v2019_v2, %v2021_v3 }
 0x277   : > { %v2027_v6 = vpop.f32.mrb[23].mxu1 }
 0x278   : > { %798 = vmax.xlane.f32.xlu1 %v797_v5  ;;  %v800_v7 = vmax.f32 %v2023_v4, %v2027_v6 }
 0x27a   : > { %801 = vmax.xlane.f32.xlu0 %v800_v7 }
 0x27c   : > { %v2031_v8 = vpop.f32.mrb[24].mxu1 }
 0x27d   : > { %v2033_v9 = vpop.f32.mrb[25].mxu1 }
 0x27e   : > { %v2035_v10 = vpop.f32.mrb[26].mxu1  ;;  %v803_v11 = vmax.f32 %v2031_v8, %v2033_v9 }
 0x27f   : > { %v2039_v12 = vpop.f32.mrb[27].mxu1 }
 0x280   : > { %804 = vmax.xlane.f32.xlu1 %v803_v11  ;;  %v806_v13 = vmax.f32 %v2035_v10, %v2039_v12 }
 0x282   : > { %807 = vmax.xlane.f32.xlu0 %v806_v13 }
 0x284   : > { %v2043_v14 = vpop.f32.mrb[28].mxu1 }
 0x285   : > { %v2045_v15 = vpop.f32.mrb[29].mxu1 }
 0x286   : > { %v2047_v16 = vpop.f32.mrb[30].mxu1  ;;  %v809_v17 = vmax.f32 %v2043_v14, %v2045_v15 }
 0x287   : > { %v2051_v18 = vpop.f32.mrb[31].mxu1 }
 0x288   : > { %810 = vmax.xlane.f32.xlu1 %v809_v17  ;;  %v812_v19 = vmax.f32 %v2047_v16, %v2051_v18 }
 0x28a   : > { %813 = vmax.xlane.f32.xlu0 %v812_v19 }
 0x28c   : > { %v2055_v20 = vpop.f32.mrb[32].mxu1 }
 0x28d   : > { %v2057_v21 = vpop.f32.mrb[33].mxu1 }
 0x28e   : > { %v2059_v22 = vpop.f32.mrb[34].mxu1  ;;  %v815_v23 = vmax.f32 %v2055_v20, %v2057_v21 }
 0x28f   : > { %v2063_v24 = vpop.f32.mrb[35].mxu1 }
 0x290   : > { %816 = vmax.xlane.f32.xlu1 %v815_v23  ;;  %v818_v25 = vmax.f32 %v2059_v22, %v2063_v24 }
 0x292   : > { %819 = vmax.xlane.f32.xlu0 %v818_v25 }
 0x294   : > { %v2067_v26 = vpop.f32.mrb[36].mxu1 }
 0x295   : > { %v2069_v27 = vpop.f32.mrb[37].mxu1 }
 0x296   : > { %v2071_v28 = vpop.f32.mrb[38].mxu1  ;;  %v821_v29 = vmax.f32 %v2067_v26, %v2069_v27 }
 0x297   : > { %v2075_v30 = vpop.f32.mrb[39].mxu1 }
 0x298   : > { %822 = vmax.xlane.f32.xlu1 %v821_v29  ;;  %v824_v31 = vmax.f32 %v2071_v28, %v2075_v30 }
 0x29a   : > { %825 = vmax.xlane.f32.xlu0 %v824_v31 }
 0x29c   : > { %v2079_v32 = vpop.f32.mrb[40].mxu1 }
 0x29d   : > { %v2081_v33 = vpop.f32.mrb[41].mxu1 }
 0x29e   : > { %v2083_v34 = vpop.f32.mrb[42].mxu1  ;;  %v827_v35 = vmax.f32 %v2079_v32, %v2081_v33 }
 0x29f   : > { %v2087_v39 = vpop.f32.mrb[43].mxu1 }
 0x2a0   : > { %828 = vmax.xlane.f32.xlu1 %v827_v35  ;;  %v830_v41 = vmax.f32 %v2083_v34, %v2087_v39 }
 0x2a2   : > { %831 = vmax.xlane.f32.xlu0 %v830_v41 }
 0x2a4   : > { %v2093_v50 = vpop.f32.mrb[44].mxu1 }
 0x2a5   : > { %v2095_v56 = vpop.f32.mrb[45].mxu1 }
 0x2a6   : > { %v2097_v58 = vpop.f32.mrb[46].mxu1  ;;  %v833_v62 = vmax.f32 %v2093_v50, %v2095_v56 }
 0x2a7   : > { %v2101_v1 = vpop.f32.mrb[47].mxu1 }
 0x2a8   : > { %834 = vmax.xlane.f32.xlu1 %v833_v62  ;;  %v836_v5 = vmax.f32 %v2097_v58, %v2101_v1 }
 0x2aa   : > { %837 = vmax.xlane.f32.xlu0 %v836_v5 }
 0x2ac   : > { %v2105_v7 = vpop.f32.mrb[48].mxu1 }
 0x2ad   : > { %v2107_v11 = vpop.f32.mrb[49].mxu1 }
 0x2ae   : > { %v2109_v13 = vpop.f32.mrb[50].mxu1  ;;  %v839_v17 = vmax.f32 %v2105_v7, %v2107_v11 }
 0x2af   : > { %2543 = vst [vmem:[#allocation3_spill] sm:$0xff] %v2109_v13  ;;  %v2113_v19 = vpop.f32.mrb[51].mxu1 }
 0x2b0   : > { %2544 = vst [vmem:[#allocation4_spill] sm:$0xff] %v2113_v19  ;;  %840 = vmax.xlane.f32.xlu1 %v839_v17  ;;  %v842_v23 = vmax.f32 %v2109_v13, %v2113_v19 }
 0x2b2   : > { %843 = vmax.xlane.f32.xlu0 %v842_v23 }
 0x2b4   : > { %v2117_v25 = vpop.f32.mrb[52].mxu1 }
 0x2b5   : > { %2545 = vst [vmem:[#allocation5_spill] sm:$0xff] %v2117_v25  ;;  %v2119_v29 = vpop.f32.mrb[53].mxu1 }
 0x2b6   : > { %2546 = vst [vmem:[#allocation6_spill] sm:$0xff] %v2119_v29  ;;  %v2121_v31 = vpop.f32.mrb[54].mxu1  ;;  %v845_v35 = vmax.f32 %v2117_v25, %v2119_v29 }
 0x2b7   : > { %2547 = vst [vmem:[#allocation7_spill] sm:$0xff] %v2121_v31  ;;  %v2125_v41 = vpop.f32.mrb[55].mxu1 }
 0x2b8   : > { %2548 = vst [vmem:[#allocation8_spill] sm:$0xff] %v2125_v41  ;;  %846 = vmax.xlane.f32.xlu1 %v845_v35  ;;  %v848_v44 = vmax.f32 %v2121_v31, %v2125_v41 }
 0x2ba   : > { %849 = vmax.xlane.f32.xlu0 %v848_v44 }
 0x2bc   : > { %v2129_v46 = vpop.f32.mrb[56].mxu1 }
 0x2bd   : > { %2549 = vst [vmem:[#allocation9_spill] sm:$0xff] %v2129_v46  ;;  %v2131_v52 = vpop.f32.mrb[57].mxu1 }
 0x2be   : > { %2550 = vst [vmem:[#allocation10_spill] sm:$0xff] %v2131_v52  ;;  %v2133_v62 = vpop.f32.mrb[58].mxu1  ;;  %v851_v5 = vmax.f32 %v2129_v46, %v2131_v52 }
 0x2bf   : > { %2551 = vst [vmem:[#allocation11_spill] sm:$0xff] %v2133_v62  ;;  %v2137_v17 = vpop.f32.mrb[59].mxu1 }
 0x2c0   : > { %2552 = vst [vmem:[#allocation12_spill] sm:$0xff] %v2137_v17  ;;  %852 = vmax.xlane.f32.xlu1 %v851_v5  ;;  %v854_v23 = vmax.f32 %v2133_v62, %v2137_v17 }
 0x2c2   : > { %855 = vmax.xlane.f32.xlu0 %v854_v23 }
 0x2c4   : > { %v2141_v35 = vpop.f32.mrb[60].mxu1 }
 0x2c5   : > { %2553 = vst [vmem:[#allocation13_spill] sm:$0xff] %v2141_v35  ;;  %v2143_v41 = vpop.f32.mrb[61].mxu1 }
 0x2c6   : > { %2554 = vst [vmem:[#allocation14_spill] sm:$0xff] %v2143_v41  ;;  %v2145_v44 = vpop.f32.mrb[62].mxu1  ;;  %v857_v31 = vmax.f32 %v2141_v35, %v2143_v41 }
 0x2c7   : > { %v2149_v29 = vpop.f32.mrb[63].mxu1 }
 0x2c8   : > { %2555 = vst [vmem:[#allocation15_spill] sm:$0xff] %v2149_v29  ;;  %v860_v52 = vmax.f32 %v2145_v44, %v2149_v29  ;;  %858 = vmax.xlane.f32.xlu1 %v857_v31 }
 0x2ca   : > { %861 = vmax.xlane.f32.xlu0 %v860_v52 }
 0x2dd   : > { %v769_v5 = vpop.xlane.xlu0 %768 }
 0x2de   : > { %v863_v17 = vsub.f32 %v1959_v36, %v769_v5  ;;  %v864_v23 = vsub.f32 %v1961_v37, %v769_v5 }
 0x2df   : > { %v772_v62 = vpop.xlane.xlu1 %771 }
 0x2e0   : > { %v927_v46 = vmul.f32 1.442695, %v863_v17  ;;  %v929_v25 = vmul.f32 1.442695, %v864_v23  ;;  %v865_v19 = vsub.f32 %v1963_v38, %v772_v62  ;;  %v866_v13 = vsub.f32 %v1967_v40, %v772_v62 }
 0x2e2   : > { %1555 = vpow2.f32 %v927_v46  ;;  %v931_v41 = vmul.f32 1.442695, %v865_v19  ;;  %v933_v35 = vmul.f32 1.442695, %v866_v13 }
 0x2e3   : > { %1557 = vpow2.f32 %v929_v25 }
 0x2e4   : > { %1559 = vpow2.f32 %v931_v41 }
 0x2e5   : > { %1561 = vpow2.f32 %v933_v35  ;;  %v775_v31 = vpop.xlane.xlu0 %774 }
 0x2e6   : > { %v867_v52 = vsub.f32 %v1971_v0, %v775_v31  ;;  %v868_v36 = vsub.f32 %v1973_v42, %v775_v31 }
 0x2e8   : > { %v935_v29 = vmul.f32 1.442695, %v867_v52  ;;  %v937_v37 = vmul.f32 1.442695, %v868_v36 }
 0x2e9   : > { %v778_v5 = vpop.xlane.xlu0 %777 }
 0x2ea   : > { %1563 = vpow2.f32 %v935_v29  ;;  %v869_v17 = vsub.f32 %v1975_v43, %v778_v5  ;;  %v870_v38 = vsub.f32 %v1979_v45, %v778_v5 }
 0x2eb   : > { %1565 = vpow2.f32 %v937_v37 }
 0x2ec   : > { %v2161_v40 = vpop.eup %1555  ;;  %v939_v13 = vmul.f32 1.442695, %v869_v17  ;;  %v941_v19 = vmul.f32 1.442695, %v870_v38 }
 0x2ed   : > { %v2163_v25 = vpop.eup %1557  ;;  %v781_v41 = vpop.xlane.xlu1 %780 }
 0x2ee   : > { %v2165_v46 = vpop.eup %1559  ;;  %1567 = vpow2.f32 %v939_v13  ;;  %v871_v0 = vsub.f32 %v1983_v47, %v781_v41  ;;  %v872_v42 = vsub.f32 %v1985_v48, %v781_v41  ;;  %v1055_v43 = vadd.f32 %v2163_v25, %v2161_v40 }
 0x2ef   : > { %v2171_v29 = vpop.eup %1561  ;;  %1569 = vpow2.f32 %v941_v19  ;;  %v784_v45 = vpop.xlane.xlu0 %783 }
 0x2f0   : > { %v943_v62 = vmul.f32 1.442695, %v871_v0  ;;  %v945_v35 = vmul.f32 1.442695, %v872_v42  ;;  %1056 = vadd.xlane.f32.xlu1 %v1055_v43  ;;  %v873_v23 = vsub.f32 %v1987_v49, %v784_v45  ;;  %v874_v31 = vsub.f32 %v1991_v51, %v784_v45 }
 0x2f1   : > { %v1058_v52 = vadd.f32 %v2171_v29, %v2165_v46 }
 0x2f2   : > { %1571 = vpow2.f32 %v943_v62  ;;  %v947_v47 = vmul.f32 1.442695, %v873_v23  ;;  %v949_v48 = vmul.f32 1.442695, %v874_v31 }
 0x2f3   : > { %1573 = vpow2.f32 %v945_v35  ;;  %1059 = vadd.xlane.f32.xlu0 %v1058_v52 }
 0x2f4   : > { %v2177_v36 = vpop.eup %1563  ;;  %1575 = vpow2.f32 %v947_v47 }
 0x2f5   : > { %v2179_v37 = vpop.eup %1565  ;;  %1577 = vpow2.f32 %v949_v48  ;;  %v787_v5 = vpop.xlane.xlu1 %786 }
 0x2f6   : > { %v875_v17 = vsub.f32 %v1995_v53, %v787_v5  ;;  %v876_v49 = vsub.f32 %v1997_v54, %v787_v5  ;;  %v1061_v51 = vadd.f32 %v2179_v37, %v2177_v36 }
 0x2f7   : > { %v790_v38 = vpop.xlane.xlu0 %789 }
 0x2f8   : > { %v2185_v13 = vpop.eup %1567  ;;  %v951_v19 = vmul.f32 1.442695, %v875_v17  ;;  %v953_v41 = vmul.f32 1.442695, %v876_v49  ;;  %1062 = vadd.xlane.f32.xlu1 %v1061_v51  ;;  %v877_v0 = vsub.f32 %v1999_v55, %v790_v38  ;;  %v878_v42 = vsub.f32 %v2003_v57, %v790_v38 }
 0x2f9   : > { %v2189_v43 = vpop.eup %1569 }
 0x2fa   : > { %1579 = vpow2.f32 %v951_v19  ;;  %v955_v45 = vmul.f32 1.442695, %v877_v0  ;;  %v957_v53 = vmul.f32 1.442695, %v878_v42  ;;  %v1064_v54 = vadd.f32 %v2189_v43, %v2185_v13 }
 0x2fb   : > { %1581 = vpow2.f32 %v953_v41 }
 0x2fc   : > { %v2193_v62 = vpop.eup %1571  ;;  %1583 = vpow2.f32 %v955_v45  ;;  %1065 = vadd.xlane.f32.xlu0 %v1064_v54 }
 0x2fd   : > { %v2195_v35 = vpop.eup %1573  ;;  %1585 = vpow2.f32 %v957_v53  ;;  %v793_v23 = vpop.xlane.xlu1 %792 }
 0x2fe   : > { %v2197_v55 = vpop.eup %1575  ;;  %v879_v57 = vsub.f32 %v2007_v59, %v793_v23  ;;  %v880_v31 = vsub.f32 %v2009_v60, %v793_v23  ;;  %v1067_v52 = vadd.f32 %v2195_v35, %v2193_v62 }
 0x2ff   : > { %v2203_v47 = vpop.eup %1577  ;;  %v796_v48 = vpop.xlane.xlu0 %795 }
 0x300   : > { %v959_v5 = vmul.f32 1.442695, %v879_v57  ;;  %v961_v17 = vmul.f32 1.442695, %v880_v31  ;;  %1068 = vadd.xlane.f32.xlu1 %v1067_v52  ;;  %v881_v49 = vsub.f32 %v2011_v61, %v796_v48  ;;  %v882_v51 = vsub.f32 %v2015_v63, %v796_v48 }
 0x301   : > { %v1070_v38 = vadd.f32 %v2203_v47, %v2197_v55 }
 0x302   : > { %1587 = vpow2.f32 %v959_v5  ;;  %v963_v59 = vmul.f32 1.442695, %v881_v49  ;;  %v965_v19 = vmul.f32 1.442695, %v882_v51 }
 0x303   : > { %1589 = vpow2.f32 %v961_v17  ;;  %1071 = vadd.xlane.f32.xlu0 %v1070_v38 }
 0x304   : > { %v2209_v60 = vpop.eup %1579  ;;  %1591 = vpow2.f32 %v963_v59 }
 0x305   : > { %v2211_v41 = vpop.eup %1581  ;;  %1593 = vpow2.f32 %v965_v19  ;;  %v799_v0 = vpop.xlane.xlu1 %798 }
 0x306   : > { %v2213_v42 = vpop.eup %1583  ;;  %v883_v61 = vsub.f32 %v2019_v2, %v799_v0  ;;  %v884_v63 = vsub.f32 %v2021_v3, %v799_v0  ;;  %v1073_v45 = vadd.f32 %v2211_v41, %v2209_v60 }
 0x307   : > { %v2219_v53 = vpop.eup %1585  ;;  %v802_v54 = vpop.xlane.xlu0 %801 }
 0x308   : > { %v967_v23 = vmul.f32 1.442695, %v883_v61  ;;  %v969_v57 = vmul.f32 1.442695, %v884_v63  ;;  %1074 = vadd.xlane.f32.xlu1 %v1073_v45  ;;  %v885_v31 = vsub.f32 %v2023_v4, %v802_v54  ;;  %v886_v52 = vsub.f32 %v2027_v6, %v802_v54 }
 0x309   : > { %v1076_v48 = vadd.f32 %v2219_v53, %v2213_v42 }
 0x30a   : > { %1595 = vpow2.f32 %v967_v23  ;;  %v971_v2 = vmul.f32 1.442695, %v885_v31  ;;  %v973_v5 = vmul.f32 1.442695, %v886_v52 }
 0x30b   : > { %1597 = vpow2.f32 %v969_v57  ;;  %1077 = vadd.xlane.f32.xlu0 %v1076_v48 }
 0x30c   : > { %v2225_v3 = vpop.eup %1587  ;;  %1599 = vpow2.f32 %v971_v2 }
 0x30d   : > { %v2227_v17 = vpop.eup %1589  ;;  %1601 = vpow2.f32 %v973_v5  ;;  %v805_v49 = vpop.xlane.xlu1 %804 }
 0x30e   : > { %v2229_v51 = vpop.eup %1591  ;;  %v887_v4 = vsub.f32 %v2031_v8, %v805_v49  ;;  %v888_v6 = vsub.f32 %v2033_v9, %v805_v49  ;;  %v1079_v38 = vadd.f32 %v2227_v17, %v2225_v3 }
 0x30f   : > { %v2235_v59 = vpop.eup %1593  ;;  %v808_v19 = vpop.xlane.xlu0 %807 }
 0x310   : > { %v975_v0 = vmul.f32 1.442695, %v887_v4  ;;  %v977_v61 = vmul.f32 1.442695, %v888_v6  ;;  %1080 = vadd.xlane.f32.xlu1 %v1079_v38  ;;  %v889_v63 = vsub.f32 %v2035_v10, %v808_v19  ;;  %v890_v45 = vsub.f32 %v2039_v12, %v808_v19 }
 0x311   : > { %v1082_v54 = vadd.f32 %v2235_v59, %v2229_v51 }
 0x312   : > { %1603 = vpow2.f32 %v975_v0  ;;  %v979_v8 = vmul.f32 1.442695, %v889_v63  ;;  %v981_v23 = vmul.f32 1.442695, %v890_v45 }
 0x313   : > { %1605 = vpow2.f32 %v977_v61  ;;  %1083 = vadd.xlane.f32.xlu0 %v1082_v54 }
 0x314   : > { %v2241_v9 = vpop.eup %1595  ;;  %1607 = vpow2.f32 %v979_v8 }
 0x315   : > { %v2243_v57 = vpop.eup %1597  ;;  %1609 = vpow2.f32 %v981_v23  ;;  %v811_v31 = vpop.xlane.xlu1 %810 }
 0x316   : > { %v2245_v52 = vpop.eup %1599  ;;  %v891_v10 = vsub.f32 %v2043_v14, %v811_v31  ;;  %v892_v12 = vsub.f32 %v2045_v15, %v811_v31  ;;  %v1085_v48 = vadd.f32 %v2243_v57, %v2241_v9 }
 0x317   : > { %v2251_v2 = vpop.eup %1601  ;;  %v814_v5 = vpop.xlane.xlu0 %813 }
 0x318   : > { %v983_v49 = vmul.f32 1.442695, %v891_v10  ;;  %v985_v4 = vmul.f32 1.442695, %v892_v12  ;;  %1086 = vadd.xlane.f32.xlu1 %v1085_v48  ;;  %v893_v6 = vsub.f32 %v2047_v16, %v814_v5  ;;  %v894_v38 = vsub.f32 %v2051_v18, %v814_v5 }
 0x319   : > { %v1088_v19 = vadd.f32 %v2251_v2, %v2245_v52 }
 0x31a   : > { %1611 = vpow2.f32 %v983_v49  ;;  %v987_v14 = vmul.f32 1.442695, %v893_v6  ;;  %v989_v0 = vmul.f32 1.442695, %v894_v38 }
 0x31b   : > { %1613 = vpow2.f32 %v985_v4  ;;  %1089 = vadd.xlane.f32.xlu0 %v1088_v19 }
 0x31c   : > { %v2257_v15 = vpop.eup %1603  ;;  %1615 = vpow2.f32 %v987_v14 }
 0x31d   : > { %v2259_v61 = vpop.eup %1605  ;;  %1617 = vpow2.f32 %v989_v0  ;;  %v817_v63 = vpop.xlane.xlu1 %816 }
 0x31e   : > { %v2261_v45 = vpop.eup %1607  ;;  %v895_v16 = vsub.f32 %v2055_v20, %v817_v63  ;;  %v896_v18 = vsub.f32 %v2057_v21, %v817_v63  ;;  %v1091_v54 = vadd.f32 %v2259_v61, %v2257_v15 }
 0x31f   : > { %v2267_v8 = vpop.eup %1609  ;;  %v820_v23 = vpop.xlane.xlu0 %819 }
 0x320   : > { %v991_v31 = vmul.f32 1.442695, %v895_v16  ;;  %v993_v10 = vmul.f32 1.442695, %v896_v18  ;;  %1092 = vadd.xlane.f32.xlu1 %v1091_v54  ;;  %v897_v12 = vsub.f32 %v2059_v22, %v820_v23  ;;  %v898_v48 = vsub.f32 %v2063_v24, %v820_v23 }
 0x321   : > { %v1094_v5 = vadd.f32 %v2267_v8, %v2261_v45 }
 0x322   : > { %1619 = vpow2.f32 %v991_v31  ;;  %v995_v20 = vmul.f32 1.442695, %v897_v12  ;;  %v997_v49 = vmul.f32 1.442695, %v898_v48 }
 0x323   : > { %1621 = vpow2.f32 %v993_v10  ;;  %1095 = vadd.xlane.f32.xlu0 %v1094_v5 }
 0x324   : > { %v2273_v21 = vpop.eup %1611  ;;  %1623 = vpow2.f32 %v995_v20 }
 0x325   : > { %v2275_v4 = vpop.eup %1613  ;;  %1625 = vpow2.f32 %v997_v49  ;;  %v823_v6 = vpop.xlane.xlu1 %822 }
 0x326   : > { %v2277_v38 = vpop.eup %1615  ;;  %v899_v22 = vsub.f32 %v2067_v26, %v823_v6  ;;  %v900_v24 = vsub.f32 %v2069_v27, %v823_v6  ;;  %v1097_v19 = vadd.f32 %v2275_v4, %v2273_v21 }
 0x327   : > { %v2283_v14 = vpop.eup %1617  ;;  %v826_v0 = vpop.xlane.xlu0 %825 }
 0x328   : > { %v999_v63 = vmul.f32 1.442695, %v899_v22  ;;  %v1001_v16 = vmul.f32 1.442695, %v900_v24  ;;  %1098 = vadd.xlane.f32.xlu1 %v1097_v19  ;;  %v901_v18 = vsub.f32 %v2071_v28, %v826_v0  ;;  %v902_v54 = vsub.f32 %v2075_v30, %v826_v0 }
 0x329   : > { %v1100_v23 = vadd.f32 %v2283_v14, %v2277_v38 }
 0x32a   : > { %1627 = vpow2.f32 %v999_v63  ;;  %v1003_v26 = vmul.f32 1.442695, %v901_v18  ;;  %v1005_v31 = vmul.f32 1.442695, %v902_v54 }
 0x32b   : > { %1629 = vpow2.f32 %v1001_v16  ;;  %1101 = vadd.xlane.f32.xlu0 %v1100_v23 }
 0x32c   : > { %v2289_v27 = vpop.eup %1619  ;;  %1631 = vpow2.f32 %v1003_v26 }
 0x32d   : > { %v2291_v10 = vpop.eup %1621  ;;  %1633 = vpow2.f32 %v1005_v31  ;;  %v829_v12 = vpop.xlane.xlu1 %828 }
 0x32e   : > { %v2293_v48 = vpop.eup %1623  ;;  %v903_v28 = vsub.f32 %v2079_v32, %v829_v12  ;;  %v904_v30 = vsub.f32 %v2081_v33, %v829_v12  ;;  %v1103_v5 = vadd.f32 %v2291_v10, %v2289_v27 }
 0x32f   : > { %v2299_v20 = vpop.eup %1625  ;;  %v832_v49 = vpop.xlane.xlu0 %831 }
 0x330   : > { %v1007_v6 = vmul.f32 1.442695, %v903_v28  ;;  %v1009_v22 = vmul.f32 1.442695, %v904_v30  ;;  %1104 = vadd.xlane.f32.xlu1 %v1103_v5  ;;  %v905_v24 = vsub.f32 %v2083_v34, %v832_v49  ;;  %v906_v19 = vsub.f32 %v2087_v39, %v832_v49 }
 0x331   : > { %v1106_v0 = vadd.f32 %v2299_v20, %v2293_v48 }
 0x332   : > { %1635 = vpow2.f32 %v1007_v6  ;;  %v1011_v32 = vmul.f32 1.442695, %v905_v24  ;;  %v1013_v63 = vmul.f32 1.442695, %v906_v19 }
 0x333   : > { %1637 = vpow2.f32 %v1009_v22  ;;  %1107 = vadd.xlane.f32.xlu0 %v1106_v0 }
 0x334   : > { %v2305_v33 = vpop.eup %1627  ;;  %1639 = vpow2.f32 %v1011_v32 }
 0x335   : > { %v2307_v16 = vpop.eup %1629  ;;  %1641 = vpow2.f32 %v1013_v63  ;;  %v835_v18 = vpop.xlane.xlu1 %834 }
 0x336   : > { %v2309_v54 = vpop.eup %1631  ;;  %v907_v34 = vsub.f32 %v2093_v50, %v835_v18  ;;  %v908_v39 = vsub.f32 %v2095_v56, %v835_v18  ;;  %v1109_v23 = vadd.f32 %v2307_v16, %v2305_v33 }
 0x337   : > { %v2315_v26 = vpop.eup %1633  ;;  %v838_v31 = vpop.xlane.xlu0 %837 }
 0x338   : > { %v1015_v12 = vmul.f32 1.442695, %v907_v34  ;;  %v1017_v28 = vmul.f32 1.442695, %v908_v39  ;;  %1110 = vadd.xlane.f32.xlu1 %v1109_v23  ;;  %v909_v30 = vsub.f32 %v2097_v58, %v838_v31  ;;  %v910_v5 = vsub.f32 %v2101_v1, %v838_v31  ;;  %v2556_v39 = vld [vmem:[#allocation3_spill] sm:$0xff]  ;;  %v2557_v31 = vld [vmem:[#allocation4_spill] sm:$0xff] }
 0x339   : > { %v1112_v49 = vadd.f32 %v2315_v26, %v2309_v54 }
 0x33a   : > { %1643 = vpow2.f32 %v1015_v12  ;;  %v1019_v50 = vmul.f32 1.442695, %v909_v30  ;;  %v1021_v6 = vmul.f32 1.442695, %v910_v5 }
 0x33b   : > { %1645 = vpow2.f32 %v1017_v28  ;;  %1113 = vadd.xlane.f32.xlu0 %v1112_v49 }
 0x33c   : > { %v2321_v56 = vpop.eup %1635  ;;  %1647 = vpow2.f32 %v1019_v50 }
 0x33d   : > { %v2323_v22 = vpop.eup %1637  ;;  %1649 = vpow2.f32 %v1021_v6  ;;  %v841_v24 = vpop.xlane.xlu1 %840  ;;  %v2561_v6 = vld [vmem:[#allocation5_spill] sm:$0xff] }
 0x33e   : > { %v2325_v19 = vpop.eup %1639  ;;  %v911_v58 = vsub.f32 %v2105_v7, %v841_v24  ;;  %v912_v1 = vsub.f32 %v2107_v11, %v841_v24  ;;  %v1115_v0 = vadd.f32 %v2323_v22, %v2321_v56 }
 0x33f   : > { %v2331_v32 = vpop.eup %1641  ;;  %v844_v63 = vpop.xlane.xlu0 %843 }
 0x340   : > { %v1023_v18 = vmul.f32 1.442695, %v911_v58  ;;  %v1025_v34 = vmul.f32 1.442695, %v912_v1  ;;  %1116 = vadd.xlane.f32.xlu1 %v1115_v0  ;;  %v913_v23 = vsub.f32 %v2556_v39, %v844_v63  ;;  %v914_v12 = vsub.f32 %v2557_v31, %v844_v63  ;;  %v2562_v58 = vld [vmem:[#allocation6_spill] sm:$0xff] }
 0x341   : > { %v1118_v28 = vadd.f32 %v2331_v32, %v2325_v19 }
 0x342   : > { %1651 = vpow2.f32 %v1023_v18  ;;  %v1027_v7 = vmul.f32 1.442695, %v913_v23  ;;  %v1029_v30 = vmul.f32 1.442695, %v914_v12  ;;  %v2564_v23 = vld [vmem:[#allocation7_spill] sm:$0xff]  ;;  %v2565_v12 = vld [vmem:[#allocation8_spill] sm:$0xff] }
 0x343   : > { %1653 = vpow2.f32 %v1025_v34  ;;  %1119 = vadd.xlane.f32.xlu0 %v1118_v28 }
 0x344   : > { %v2337_v11 = vpop.eup %1643  ;;  %1655 = vpow2.f32 %v1027_v7 }
 0x345   : > { %2558 = vst [vmem:[#allocation3_spill] sm:$0xff] %v2337_v11  ;;  %v2339_v5 = vpop.eup %1645  ;;  %1657 = vpow2.f32 %v1029_v30  ;;  %v847_v49 = vpop.xlane.xlu1 %846 }
 0x346   : > { %2559 = vst [vmem:[#allocation4_spill] sm:$0xff] %v2339_v5  ;;  %v2341_v50 = vpop.eup %1647  ;;  %v915_v24 = vsub.f32 %v2561_v6, %v847_v49  ;;  %v916_v1 = vsub.f32 %v2562_v58, %v847_v49  ;;  %v1121_v0 = vadd.f32 %v2339_v5, %v2337_v11  ;;  %v2572_v11 = vld [vmem:[#allocation12_spill] sm:$0xff] }
 0x347   : > { %2560 = vst [vmem:[#allocation16_spill] sm:$0xff] %v2341_v50  ;;  %v2347_v63 = vpop.eup %1649  ;;  %v850_v18 = vpop.xlane.xlu0 %849 }
 0x348   : > { %2563 = vst [vmem:[#allocation5_spill] sm:$0xff] %v2347_v63  ;;  %v1031_v34 = vmul.f32 1.442695, %v915_v24  ;;  %v1033_v39 = vmul.f32 1.442695, %v916_v1  ;;  %1122 = vadd.xlane.f32.xlu1 %v1121_v0  ;;  %v917_v31 = vsub.f32 %v2564_v23, %v850_v18  ;;  %v918_v28 = vsub.f32 %v2565_v12, %v850_v18  ;;  %v2568_v0 = vld [vmem:[#allocation9_spill] sm:$0xff] }
 0x349   : > { %v1124_v7 = vadd.f32 %v2347_v63, %v2341_v50  ;;  %v2569_v18 = vld [vmem:[#allocation10_spill] sm:$0xff] }
 0x34a   : > { %1659 = vpow2.f32 %v1031_v34  ;;  %v1035_v30 = vmul.f32 1.442695, %v917_v31  ;;  %v1037_v6 = vmul.f32 1.442695, %v918_v28 }
 0x34b   : > { %1661 = vpow2.f32 %v1033_v39  ;;  %1125 = vadd.xlane.f32.xlu0 %v1124_v7 }
 0x34c   : > { %v2353_v49 = vpop.eup %1651  ;;  %1663 = vpow2.f32 %v1035_v30  ;;  %v2571_v30 = vld [vmem:[#allocation11_spill] sm:$0xff] }
 0x34d   : > { %2566 = vst [vmem:[#allocation6_spill] sm:$0xff] %v2353_v49  ;;  %v2355_v58 = vpop.eup %1653  ;;  %1665 = vpow2.f32 %v1037_v6  ;;  %v853_v24 = vpop.xlane.xlu1 %852 }
 0x34e   : > { %v2357_v1 = vpop.eup %1655  ;;  %v919_v23 = vsub.f32 %v2568_v0, %v853_v24  ;;  %v920_v12 = vsub.f32 %v2569_v18, %v853_v24  ;;  %v1127_v34 = vadd.f32 %v2355_v58, %v2353_v49 }
 0x34f   : > { %2567 = vst [vmem:[#allocation7_spill] sm:$0xff] %v2357_v1  ;;  %v2363_v31 = vpop.eup %1657  ;;  %v856_v39 = vpop.xlane.xlu0 %855 }
 0x350   : > { %2570 = vst [vmem:[#allocation8_spill] sm:$0xff] %v2363_v31  ;;  %v1039_v28 = vmul.f32 1.442695, %v919_v23  ;;  %v1041_v7 = vmul.f32 1.442695, %v920_v12  ;;  %1128 = vadd.xlane.f32.xlu1 %v1127_v34  ;;  %v921_v50 = vsub.f32 %v2571_v30, %v856_v39  ;;  %v922_v6 = vsub.f32 %v2572_v11, %v856_v39  ;;  %v2573_v34 = vld [vmem:[#allocation13_spill] sm:$0xff] }
 0x351   : > { %v1130_v63 = vadd.f32 %v2363_v31, %v2357_v1  ;;  %v2574_v11 = vld [vmem:[#allocation14_spill] sm:$0xff]  ;;  %v2575_v1 = vld [vmem:[#allocation15_spill] sm:$0xff] }
 0x352   : > { %1667 = vpow2.f32 %v1039_v28  ;;  %v1043_v0 = vmul.f32 1.442695, %v921_v50  ;;  %v1045_v5 = vmul.f32 1.442695, %v922_v6 }
 0x353   : > { %1669 = vpow2.f32 %v1041_v7  ;;  %1131 = vadd.xlane.f32.xlu0 %v1130_v63 }
 0x354   : > { %v2369_v24 = vpop.eup %1659  ;;  %1671 = vpow2.f32 %v1043_v0 }
 0x355   : > { %v2371_v18 = vpop.eup %1661  ;;  %1673 = vpow2.f32 %v1045_v5  ;;  %v859_v23 = vpop.xlane.xlu1 %858 }
 0x356   : > { %v2373_v12 = vpop.eup %1663  ;;  %v923_v30 = vsub.f32 %v2573_v34, %v859_v23  ;;  %v924_v39 = vsub.f32 %v2574_v11, %v859_v23  ;;  %v1133_v28 = vadd.f32 %v2371_v18, %v2369_v24 }
 0x357   : > { %v2379_v50 = vpop.eup %1665  ;;  %v862_v7 = vpop.xlane.xlu0 %861 }
 0x358   : > { %v1047_v63 = vmul.f32 1.442695, %v923_v30  ;;  %v1049_v6 = vmul.f32 1.442695, %v924_v39  ;;  %1134 = vadd.xlane.f32.xlu1 %v1133_v28  ;;  %v925_v0 = vsub.f32 %v2145_v44, %v862_v7  ;;  %v926_v5 = vsub.f32 %v2575_v1, %v862_v7 }
 0x359   : > { %v1136_v49 = vadd.f32 %v2379_v50, %v2373_v12 }
 0x35a   : > { %1675 = vpow2.f32 %v1047_v63  ;;  %v1051_v34 = vmul.f32 1.442695, %v925_v0  ;;  %v1053_v31 = vmul.f32 1.442695, %v926_v5  ;;  %v392_v0 = vld [vmem:[%s1891_s9 + $0x20] sm:$0xff]  ;;  %v2410_v5 = vpop.f32.mrb[8].mxu0 }
 0x35b   : > { %1677 = vpow2.f32 %v1049_v6  ;;  %1137 = vadd.xlane.f32.xlu0 %v1136_v49  ;;  %2583 = vst [vmem:[#allocation17_spill] sm:$0xff] %v2410_v5 }
 0x35c   : > { %v2385_v23 = vpop.eup %1667  ;;  %1679 = vpow2.f32 %v1051_v34  ;;  %v2412_v34 = vpop.f32.mrb[9].mxu0 }
 0x35d   : > { %2576 = vst [vmem:[#allocation9_spill] sm:$0xff] %v2385_v23  ;;  %v2387_v11 = vpop.eup %1669  ;;  %1681 = vpow2.f32 %v1053_v31  ;;  %2584 = vst [vmem:[#allocation18_spill] sm:$0xff] %v2412_v34 }
 0x35e   : > { %v2389_v30 = vpop.eup %1671  ;;  %v1139_v44 = vadd.f32 %v2387_v11, %v2385_v23  ;;  %v393_v23 = vld [vmem:[%s1891_s9 + $0x28] sm:$0xff] }
 0x35f   : > { %2577 = vst [vmem:[#allocation10_spill] sm:$0xff] %v2389_v30  ;;  %v2393_v1 = vpop.eup %1673 }
 0x360   : > { %2578 = vst [vmem:[#allocation11_spill] sm:$0xff] %v2393_v1  ;;  %1140 = vadd.xlane.f32.xlu1 %v1139_v44  ;;  %v1142_v39 = vadd.f32 %v2393_v1, %v2389_v30  ;;  %v2414_v44 = vpop.f32.mrb[10].mxu0 }
 0x361   : > { %2585 = vst [vmem:[#allocation19_spill] sm:$0xff] %v2414_v44 }
 0x362   : > { %1143 = vadd.xlane.f32.xlu0 %v1142_v39  ;;  %v2416_v39 = vpop.f32.mrb[11].mxu0 }
 0x363   : > { %2586 = vst [vmem:[#allocation20_spill] sm:$0xff] %v2416_v39 }
 0x364   : > { %v2397_v49 = vpop.eup %1675 }
 0x365   : > { %2579 = vst [vmem:[#allocation12_spill] sm:$0xff] %v2397_v49  ;;  %v2399_v28 = vpop.eup %1677 }
 0x366   : > { %2580 = vst [vmem:[#allocation13_spill] sm:$0xff] %v2399_v28  ;;  %v2401_v7 = vpop.eup %1679  ;;  %v1145_v31 = vadd.f32 %v2399_v28, %v2397_v49 }
 0x367   : > { %2581 = vst [vmem:[#allocation14_spill] sm:$0xff] %v2401_v7  ;;  %v2405_v63 = vpop.eup %1681 }
 0x368   : > { %2582 = vst [vmem:[#allocation15_spill] sm:$0xff] %v2405_v63  ;;  %1146 = vadd.xlane.f32.xlu1 %v1145_v31  ;;  %v1148_v6 = vadd.f32 %v2405_v63, %v2401_v7 }
 0x36a   : > { %1149 = vadd.xlane.f32.xlu0 %v1148_v6 }
 0x379   : > { %416 = vperm.xlu1 %1554, %v392_v0  }
 0x37d   : > { %v1057_v30 = vpop.xlane.xlu1 %1056 }
 0x37e   : > { %1683 = vrcp.f32 %v1057_v30 }
 0x380   : > { %v1060_v49 = vpop.xlane.xlu0 %1059  ;;  %421 = vperm.xlu0 %1553, %v393_v23  }
 0x381   : > { %1685 = vrcp.f32 %v1060_v49 }
 0x385   : > { %v1063_v31 = vpop.xlane.xlu1 %1062 }
 0x386   : > { %1687 = vrcp.f32 %v1063_v31 }
 0x388   : > { %v1684_v7 = vpop.eup %1683 }
 0x389   : > { %v1066_v6 = vpop.xlane.xlu0 %1065  ;;  %v1184_v63 = vmul.f32 %v1684_v7, %v2163_v25  ;;  %v1183_v44 = vmul.f32 %v1684_v7, %v2161_v40 }
 0x38a   : > { %1689 = vrcp.f32 %v1066_v6 }
 0x38b   : > { %v1686_v0 = vpop.eup %1685 }
 0x38c   : > { %v1186_v28 = vmul.f32 %v1686_v0, %v2171_v29  ;;  %v1185_v39 = vmul.f32 %v1686_v0, %v2165_v46 }
 0x38d   : > { %v1069_v34 = vpop.xlane.xlu1 %1068 }
 0x38e   : > { %v1248_v5 = vpack.c.bf16 %v1186_v28, %v1184_v63  ;;  %v1247_v30 = vpack.c.bf16 %v1185_v39, %v1183_v44  ;;  %1691 = vrcp.f32 %v1069_v34 }
 0x390   : > { %1279 = vmatprep.subr.bf16.mxu0 %v1248_v5  ;;  %v1072_v23 = vpop.xlane.xlu0 %1071  ;;  %v1688_v49 = vpop.eup %1687 }
 0x391   : > { %1693 = vrcp.f32 %v1072_v23  ;;  %1280 = vmatpush1.bf16.msra.mxu0 %v1247_v30  ;;  %v1188_v1 = vmul.f32 %v1688_v49, %v2179_v37  ;;  %v1187_v29 = vmul.f32 %v1688_v49, %v2177_v36 }
 0x394   : > { %v1690_v31 = vpop.eup %1689 }
 0x395   : > { %v1075_v6 = vpop.xlane.xlu1 %1074  ;;  %v1190_v25 = vmul.f32 %v1690_v31, %v2189_v43  ;;  %v1189_v40 = vmul.f32 %v1690_v31, %v2185_v13 }
 0x396   : > { %1695 = vrcp.f32 %v1075_v6 }
 0x397   : > { %v1250_v46 = vpack.c.bf16 %v1190_v25, %v1188_v1  ;;  %v1249_v28 = vpack.c.bf16 %v1189_v40, %v1187_v29 }
 0x398   : > { %v1078_v7 = vpop.xlane.xlu0 %1077  ;;  %v1692_v63 = vpop.eup %1691 }
 0x399   : > { %1697 = vrcp.f32 %v1078_v7  ;;  %1281 = vmatprep.subr.bf16.mxu0 %v1250_v46  ;;  %v1192_v34 = vmul.f32 %v1692_v63, %v2195_v35  ;;  %v1191_v37 = vmul.f32 %v1692_v63, %v2193_v62 }
 0x39a   : > { %1282 = vmatpush1.bf16.msra.mxu0 %v1249_v28 }
 0x39b   : > { %v1694_v5 = vpop.eup %1693 }
 0x39c   : > { %v1194_v44 = vmul.f32 %v1694_v5, %v2203_v47  ;;  %v1193_v43 = vmul.f32 %v1694_v5, %v2197_v55 }
 0x39d   : > { %v1081_v36 = vpop.xlane.xlu1 %1080 }
 0x39e   : > { %v1252_v39 = vpack.c.bf16 %v1194_v44, %v1192_v34  ;;  %v1251_v13 = vpack.c.bf16 %v1193_v43, %v1191_v37  ;;  %1699 = vrcp.f32 %v1081_v36 }
 0x3a0   : > { %1283 = vmatprep.subr.bf16.mxu0 %v1252_v39  ;;  %v1084_v1 = vpop.xlane.xlu0 %1083  ;;  %v1696_v0 = vpop.eup %1695 }
 0x3a1   : > { %1701 = vrcp.f32 %v1084_v1  ;;  %1284 = vmatpush1.bf16.msra.mxu0 %v1251_v13  ;;  %v1196_v23 = vmul.f32 %v1696_v0, %v2211_v41  ;;  %v1195_v47 = vmul.f32 %v1696_v0, %v2209_v60 }
 0x3a3   : > { %v1698_v30 = vpop.eup %1697 }
 0x3a4   : > { %v1198_v35 = vmul.f32 %v1698_v30, %v2219_v53  ;;  %v1197_v62 = vmul.f32 %v1698_v30, %v2213_v42 }
 0x3a5   : > { %v1087_v49 = vpop.xlane.xlu1 %1086 }
 0x3a6   : > { %v1254_v55 = vpack.c.bf16 %v1198_v35, %v1196_v23  ;;  %v1253_v31 = vpack.c.bf16 %v1197_v62, %v1195_v47  ;;  %1703 = vrcp.f32 %v1087_v49 }
 0x3a8   : > { %1285 = vmatprep.subr.bf16.mxu0 %v1254_v55  ;;  %v1090_v6 = vpop.xlane.xlu0 %1089  ;;  %v1700_v25 = vpop.eup %1699 }
 0x3a9   : > { %1705 = vrcp.f32 %v1090_v6  ;;  %1286 = vmatpush1.bf16.msra.mxu0 %v1253_v31  ;;  %v1200_v40 = vmul.f32 %v1700_v25, %v2227_v17  ;;  %v1199_v53 = vmul.f32 %v1700_v25, %v2225_v3 }
 0x3ab   : > { %v1702_v29 = vpop.eup %1701 }
 0x3ac   : > { %v1202_v41 = vmul.f32 %v1702_v29, %v2235_v59  ;;  %v1201_v60 = vmul.f32 %v1702_v29, %v2229_v51 }
 0x3ad   : > { %v1093_v46 = vpop.xlane.xlu1 %1092 }
 0x3ae   : > { %v1256_v42 = vpack.c.bf16 %v1202_v41, %v1200_v40  ;;  %v1255_v28 = vpack.c.bf16 %v1201_v60, %v1199_v53  ;;  %1707 = vrcp.f32 %v1093_v46 }
 0x3b0   : > { %1287 = vmatprep.subr.bf16.mxu0 %v1256_v42  ;;  %v1096_v7 = vpop.xlane.xlu0 %1095  ;;  %v1704_v63 = vpop.eup %1703 }
 0x3b1   : > { %1709 = vrcp.f32 %v1096_v7  ;;  %1288 = vmatpush1.bf16.msra.mxu0 %v1255_v28  ;;  %v1204_v34 = vmul.f32 %v1704_v63, %v2243_v57  ;;  %v1203_v59 = vmul.f32 %v1704_v63, %v2241_v9 }
 0x3b3   : > { %v1706_v5 = vpop.eup %1705 }
 0x3b4   : > { %v1206_v17 = vmul.f32 %v1706_v5, %v2251_v2  ;;  %v1205_v3 = vmul.f32 %v1706_v5, %v2245_v52 }
 0x3b5   : > { %v1099_v44 = vpop.xlane.xlu1 %1098 }
 0x3b6   : > { %v1258_v51 = vpack.c.bf16 %v1206_v17, %v1204_v34  ;;  %v1257_v37 = vpack.c.bf16 %v1205_v3, %v1203_v59  ;;  %1711 = vrcp.f32 %v1099_v44 }
 0x3b8   : > { %1289 = vmatprep.subr.bf16.mxu0 %v1258_v51  ;;  %v1102_v43 = vpop.xlane.xlu0 %1101  ;;  %v1708_v36 = vpop.eup %1707 }
 0x3b9   : > { %1713 = vrcp.f32 %v1102_v43  ;;  %1290 = vmatpush1.bf16.msra.mxu0 %v1257_v37  ;;  %v1208_v13 = vmul.f32 %v1708_v36, %v2259_v61  ;;  %v1207_v2 = vmul.f32 %v1708_v36, %v2257_v15  ;;  %v2587_v37 = vld [vmem:[#allocation4_spill] sm:$0xff]  ;;  %v2588_v36 = vld [vmem:[#allocation5_spill] sm:$0xff] }
 0x3bb   : > { %v1710_v39 = vpop.eup %1709 }
 0x3bc   : > { %v1210_v57 = vmul.f32 %v1710_v39, %v2267_v8  ;;  %v1209_v9 = vmul.f32 %v1710_v39, %v2261_v45  ;;  %v2589_v39 = vld [vmem:[#allocation3_spill] sm:$0xff] }
 0x3bd   : > { %v1105_v1 = vpop.xlane.xlu1 %1104 }
 0x3be   : > { %v1260_v52 = vpack.c.bf16 %v1210_v57, %v1208_v13  ;;  %v1259_v0 = vpack.c.bf16 %v1209_v9, %v1207_v2  ;;  %1715 = vrcp.f32 %v1105_v1  ;;  %v2590_v13 = vld [vmem:[#allocation16_spill] sm:$0xff] }
 0x3c0   : > { %1291 = vmatprep.subr.bf16.mxu0 %v1260_v52  ;;  %v1108_v30 = vpop.xlane.xlu0 %1107  ;;  %v1712_v23 = vpop.eup %1711 }
 0x3c1   : > { %1717 = vrcp.f32 %v1108_v30  ;;  %1292 = vmatpush1.bf16.msra.mxu0 %v1259_v0  ;;  %v1212_v47 = vmul.f32 %v1712_v23, %v2275_v4  ;;  %v1211_v8 = vmul.f32 %v1712_v23, %v2273_v21  ;;  %v2591_v30 = vld [vmem:[#allocation8_spill] sm:$0xff] }
 0x3c3   : > { %v1714_v35 = vpop.eup %1713 }
 0x3c4   : > { %v1214_v61 = vmul.f32 %v1714_v35, %v2283_v14  ;;  %v1213_v15 = vmul.f32 %v1714_v35, %v2277_v38  ;;  %v2592_v35 = vld [vmem:[#allocation6_spill] sm:$0xff] }
 0x3c5   : > { %v1111_v62 = vpop.xlane.xlu1 %1110 }
 0x3c6   : > { %v1262_v45 = vpack.c.bf16 %v1214_v61, %v1212_v47  ;;  %v1261_v49 = vpack.c.bf16 %v1213_v15, %v1211_v8  ;;  %1719 = vrcp.f32 %v1111_v62  ;;  %v2593_v61 = vld [vmem:[#allocation7_spill] sm:$0xff] }
 0x3c8   : > { %1293 = vmatprep.subr.bf16.mxu0 %v1262_v45  ;;  %v1114_v55 = vpop.xlane.xlu0 %1113  ;;  %v1716_v31 = vpop.eup %1715 }
 0x3c9   : > { %1721 = vrcp.f32 %v1114_v55  ;;  %1294 = vmatpush1.bf16.msra.mxu0 %v1261_v49  ;;  %v1216_v25 = vmul.f32 %v1716_v31, %v2291_v10  ;;  %v1215_v14 = vmul.f32 %v1716_v31, %v2289_v27 }
 0x3cb   : > { %v1718_v6 = vpop.eup %1717 }
 0x3cc   : > { %v1218_v4 = vmul.f32 %v1718_v6, %v2299_v20  ;;  %v1217_v21 = vmul.f32 %v1718_v6, %v2293_v48 }
 0x3cd   : > { %v1117_v29 = vpop.xlane.xlu1 %1116 }
 0x3ce   : > { %v1264_v38 = vpack.c.bf16 %v1218_v4, %v1216_v25  ;;  %v1263_v40 = vpack.c.bf16 %v1217_v21, %v1215_v14  ;;  %1723 = vrcp.f32 %v1117_v29 }
 0x3d0   : > { %1295 = vmatprep.subr.bf16.mxu0 %v1264_v38  ;;  %v1120_v41 = vpop.xlane.xlu0 %1119  ;;  %v1720_v53 = vpop.eup %1719 }
 0x3d1   : > { %1725 = vrcp.f32 %v1120_v41  ;;  %1296 = vmatpush1.bf16.msra.mxu0 %v1263_v40  ;;  %v1220_v46 = vmul.f32 %v1720_v53, %v2307_v16  ;;  %v1219_v20 = vmul.f32 %v1720_v53, %v2305_v33 }
 0x3d3   : > { %v1722_v60 = vpop.eup %1721 }
 0x3d4   : > { %v1222_v10 = vmul.f32 %v1722_v60, %v2315_v26  ;;  %v1221_v27 = vmul.f32 %v1722_v60, %v2309_v54  ;;  %v2594_v60 = vld [vmem:[#allocation11_spill] sm:$0xff] }
 0x3d5   : > { %v1123_v42 = vpop.xlane.xlu1 %1122 }
 0x3d6   : > { %v1266_v48 = vpack.c.bf16 %v1222_v10, %v1220_v46  ;;  %v1265_v28 = vpack.c.bf16 %v1221_v27, %v1219_v20  ;;  %1727 = vrcp.f32 %v1123_v42  ;;  %v2595_v46 = vld [vmem:[#allocation9_spill] sm:$0xff]  ;;  %v2596_v10 = vld [vmem:[#allocation10_spill] sm:$0xff] }
 0x3d8   : > { %1297 = vmatprep.subr.bf16.mxu0 %v1266_v48  ;;  %v1126_v7 = vpop.xlane.xlu0 %1125  ;;  %v1724_v63 = vpop.eup %1723 }
 0x3d9   : > { %1729 = vrcp.f32 %v1126_v7  ;;  %1298 = vmatpush1.bf16.msra.mxu0 %v1265_v28  ;;  %v1224_v34 = vmul.f32 %v1724_v63, %v2323_v22  ;;  %v1223_v26 = vmul.f32 %v1724_v63, %v2321_v56  ;;  %v2597_v28 = vld [vmem:[#allocation17_spill] sm:$0xff]  ;;  %v2598_v63 = vld [vmem:[#allocation18_spill] sm:$0xff] }
 0x3db   : > { %v1726_v5 = vpop.eup %1725 }
 0x3dc   : > { %v1226_v16 = vmul.f32 %v1726_v5, %v2331_v32  ;;  %v1225_v33 = vmul.f32 %v1726_v5, %v2325_v19 }
 0x3dd   : > { %v1129_v17 = vpop.xlane.xlu1 %1128 }
 0x3de   : > { %v1268_v54 = vpack.c.bf16 %v1226_v16, %v1224_v34  ;;  %v1267_v59 = vpack.c.bf16 %v1225_v33, %v1223_v26  ;;  %1731 = vrcp.f32 %v1129_v17  ;;  %v2599_v34 = vld [vmem:[#allocation19_spill] sm:$0xff]  ;;  %v2600_v26 = vld [vmem:[#allocation20_spill] sm:$0xff] }
 0x3e0   : > { %1299 = vmatprep.subr.bf16.mxu0 %v1268_v54  ;;  %v1132_v3 = vpop.xlane.xlu0 %1131  ;;  %v1728_v44 = vpop.eup %1727 }
 0x3e1   : > { %1733 = vrcp.f32 %v1132_v3  ;;  %1300 = vmatpush1.bf16.msra.mxu0 %v1267_v59  ;;  %v1228_v43 = vmul.f32 %v1728_v44, %v2587_v37  ;;  %v1227_v32 = vmul.f32 %v1728_v44, %v2589_v39  ;;  %v2601_v59 = vld [vmem:[#allocation13_spill] sm:$0xff]  ;;  %v2602_v44 = vld [vmem:[#allocation15_spill] sm:$0xff]  ;;  %v2603_v37 = vld [vmem:[#allocation12_spill] sm:$0xff] }
 0x3e3   : > { %v1730_v51 = vpop.eup %1729 }
 0x3e4   : > { %v1230_v22 = vmul.f32 %v1730_v51, %v2588_v36  ;;  %v1229_v56 = vmul.f32 %v1730_v51, %v2590_v13  ;;  %v2604_v36 = vld [vmem:[#allocation14_spill] sm:$0xff]  ;;  %v1323_v13 = vstv %s1322_s16 }
 0x3e5   : > { %v1135_v57 = vpop.xlane.xlu1 %1134 }
 0x3e6   : > { %v1270_v19 = vpack.c.bf16 %v1230_v22, %v1228_v43  ;;  %v1269_v2 = vpack.c.bf16 %v1229_v56, %v1227_v32  ;;  %1735 = vrcp.f32 %v1135_v57  ;;  %v1328_v57 = vld [vmem:[%s307_s27] sm:$0xff] }
 0x3e8   : > { %1301 = vmatprep.subr.bf16.mxu0 %v1270_v19  ;;  %v1138_v9 = vpop.xlane.xlu0 %1137  ;;  %v1732_v1 = vpop.eup %1731 }
 0x3e9   : > { %1737 = vrcp.f32 %v1138_v9  ;;  %1302 = vmatpush1.bf16.msra.mxu0 %v1269_v2  ;;  %v1232_v0 = vmul.f32 %v1732_v1, %v2355_v58  ;;  %v1231_v47 = vmul.f32 %v1732_v1, %v2592_v35  ;;  %v1329_v9 = vld [vmem:[%s307_s27 + $0x8] sm:$0xff] }
 0x3eb   : > { %v1734_v52 = vpop.eup %1733 }
 0x3ec   : > { %v1234_v23 = vmul.f32 %v1734_v52, %v2591_v30  ;;  %v1233_v8 = vmul.f32 %v1734_v52, %v2593_v61 }
 0x3ed   : > { %v1141_v15 = vpop.xlane.xlu1 %1140 }
 0x3ee   : > { %1739 = vrcp.f32 %v1141_v15  ;;  %v1272_v62 = vpack.c.bf16 %v1234_v23, %v1232_v0  ;;  %v1271_v45 = vpack.c.bf16 %v1233_v8, %v1231_v47  ;;  %v1330_v0 = vld [vmem:[%s307_s27 + $0x10] sm:$0xff]  ;;  %v1331_v47 = vld [vmem:[%s307_s27 + $0x18] sm:$0xff] }
 0x3ef   : > { %v1144_v49 = vpop.xlane.xlu0 %1143 }
 0x3f0   : > { %1303 = vmatprep.subr.bf16.mxu0 %v1272_v62  ;;  %1741 = vrcp.f32 %v1144_v49  ;;  %v1736_v55 = vpop.eup %1735 }
 0x3f1   : > { %1304 = vmatpush1.bf16.msra.mxu0 %v1271_v45  ;;  %v1236_v6 = vmul.f32 %v1736_v55, %v2371_v18  ;;  %v1235_v25 = vmul.f32 %v1736_v55, %v2369_v24 }
 0x3f3   : > { %v1738_v31 = vpop.eup %1737 }
 0x3f4   : > { %v1238_v58 = vmul.f32 %v1738_v31, %v2379_v50  ;;  %v1237_v4 = vmul.f32 %v1738_v31, %v2373_v12 }
 0x3f5   : > { %v1147_v14 = vpop.xlane.xlu1 %1146 }
 0x3f6   : > { %1743 = vrcp.f32 %v1147_v14  ;;  %v1274_v21 = vpack.c.bf16 %v1238_v58, %v1236_v6  ;;  %v1273_v29 = vpack.c.bf16 %v1237_v4, %v1235_v25 }
 0x3f7   : > { %v1150_v38 = vpop.xlane.xlu0 %1149 }
 0x3f8   : > { %v1740_v40 = vpop.eup %1739  ;;  %1305 = vmatprep.subr.bf16.mxu0 %v1274_v21  ;;  %1745 = vrcp.f32 %v1150_v38 }
 0x3f9   : > { %1306 = vmatpush1.bf16.msra.mxu0 %v1273_v29  ;;  %v1240_v53 = vmul.f32 %v1740_v40, %v2387_v11  ;;  %v1239_v50 = vmul.f32 %v1740_v40, %v2595_v46  ;;  %v417_v20 = vpop.permute.xlu1 %416 }
 0x3fa   : > { %v1742_v41 = vpop.eup %1741  ;;  %v479_v7 = vadd.f32 %v2597_v28, %v417_v20  ;;  %v481_v5 = vadd.f32 %v2598_v63, %v417_v20 }
 0x3fb   : > { %v1242_v18 = vmul.f32 %v1742_v41, %v2594_v60  ;;  %v1241_v24 = vmul.f32 %v1742_v41, %v2596_v10 }
 0x3fd   : > { %v1276_v12 = vpack.c.bf16 %v1242_v18, %v1240_v53  ;;  %v1275_v27 = vpack.c.bf16 %v1241_v24, %v1239_v50 }
 0x3ff   : > { %1307 = vmatprep.subr.bf16.mxu0 %v1276_v12  ;;  %v422_v42 = vpop.permute.xlu0 %421 }
 0x400   : > { %v1744_v48 = vpop.eup %1743  ;;  %v483_v16 = vadd.f32 %v2599_v34, %v422_v42  ;;  %v485_v11 = vadd.f32 %v2600_v26, %v422_v42  ;;  %1308 = vmatpush1.bf16.msra.mxu0 %v1275_v27 }
 0x401   : > { %v1244_v3 = vmul.f32 %v1744_v48, %v2601_v59  ;;  %v1243_v43 = vmul.f32 %v1744_v48, %v2603_v37 }
 0x402   : > { %v1746_v33 = vpop.eup %1745  ;;  %v491_v17 = vpack.c.bf16 %v483_v16, %v479_v7  ;;  %v492_v54 = vpack.c.bf16 %v485_v11, %v481_v5 }
 0x403   : > { %v1246_v51 = vmul.f32 %v1746_v33, %v2602_v44  ;;  %v1245_v22 = vmul.f32 %v1746_v33, %v2604_v36 }
 0x404   : > { %1311 = vmatprep.mubr.bf16.mxu0 %v492_v54 }
 0x405   : > { %v1278_v39 = vpack.c.bf16 %v1246_v51, %v1244_v3  ;;  %v1277_v32 = vpack.c.bf16 %v1245_v22, %v1243_v43 }
 0x407   : > { %1309 = vmatprep.subr.bf16.mxu0 %v1278_v39 }
 0x408   : > { %1310 = vmatpush1.bf16.msra.mxu0 %v1277_v32 }
 0x40b   : > { %1312 = vmatmul.mubr.bf16.vlgmr.msra.gmra.mrb[12].mxu0 %v491_v17 }
 0x4de   : > { %v1313_v56 = vpop.f32.mrb[12].mxu0 }
 0x4df   : > { %v1324_v19 = vmul.f32 %v1323_v13, %v1313_v56  ;;  %v1315_v2 = vpop.f32.mrb[13].mxu0 }
 0x4e0   : > { %v1325_v1 = vmul.f32 %v1323_v13, %v1315_v2  ;;  %v1317_v52 = vpop.f32.mrb[14].mxu0 }
 0x4e1   : > { %v1332_v30 = vadd.f32 %v1328_v57, %v1324_v19  ;;  %v1326_v23 = vmul.f32 %v1323_v13, %v1317_v52  ;;  %v1319_v35 = vpop.f32.mrb[15].mxu0 }
 0x4e2   : > { %v1333_v61 = vadd.f32 %v1329_v9, %v1325_v1  ;;  %v1327_v8 = vmul.f32 %v1323_v13, %v1319_v35 }
 0x4e3   : > { %1336 = vst [vmem:[%s328_s20] sm:$0xff] %v1332_v30  ;;  %v1334_v15 = vadd.f32 %v1330_v0, %v1326_v23 }
 0x4e4   : > { %1337 = vst [vmem:[%s328_s20 + $0x8] sm:$0xff] %v1333_v61  ;;  %v1335_v62 = vadd.f32 %v1331_v47, %v1327_v8 }
 0x4e5   : > { %1338 = vst [vmem:[%s328_s20 + $0x10] sm:$0xff] %v1334_v15 }
 0x4e6   : > { %1339 = vst [vmem:[%s328_s20 + $0x18] sm:$0xff] %v1335_v62 }
 0x4e7 PF: > { %s16_s24 = sadd.s32 1, %s1785_s24   ;;  %s2605_s20 = smov %s1777_s22 }
 0x4e8   : > { %p13_p8 = scmp.ge.s32.totalorder %s16_s24, 18   ;;  %s2606_s21 = smov %s1781_s23 }
 0x4e9   : > { %s2607_s22 = smov %s2610_s0  ;;  %s2608_s23 = smov %s2614_s25 }
 0x4ea   :  { %15 = sbr.rel (!%p13_p8) target bundleno = 3 (0x3), region = 79 }

</bundles_post_ra>
